<compile_context>
chip_gen: v5e
topology: v5e:2x2
jax: 0.10.0
libtpu: 0.0.40
codegen_flags: <defaults>
</compile_context>

<pallas_src>
import functools

import jax
import jax.numpy as jnp
from jax.experimental import pallas as pl
from jax.experimental.pallas import tpu as pltpu

HEAD_PAD = 128   # lane-dense head output width: [log_probs(n_act) | value(1) | zero pad]


# ---------------------------------------------------------------------------
# Fused forward kernel (one batch element per grid step)
# ---------------------------------------------------------------------------

def _fused_forward_kernel(img_ref, mem_ref,
                          w1_ref, b1_ref, w2_ref, b2_ref, w3_ref, b3_ref,
                          wih_ref, whh_ref, blstm_ref,
                          w1h_ref, b1h_ref, w2h_ref, b2h_ref,
                          head_ref, memout_ref, *, n_act):
    x = img_ref[0]                                   # (49, 3) HWC rows, row index = i*7 + j

    # ---- conv1: 2x2, 3 -> 16 (in-kernel im2col, one MXU matmul) ----------------------
    rows = []
    for i in range(6):
        r0, r1 = i * 7, (i + 1) * 7
        rows.append(jnp.concatenate(
            [x[r0:r0 + 6, :], x[r0 + 1:r0 + 7, :],       # patch offsets (0,0), (0,1)
             x[r1:r1 + 6, :], x[r1 + 1:r1 + 7, :]],      # patch offsets (1,0), (1,1)
            axis=1))                                      # (6, 12)
    p1 = jnp.concatenate(rows, axis=0)                    # (36, 12), row = i*6 + j
    h1 = jnp.maximum(
        jnp.dot(p1, w1_ref[...], preferred_element_type=jnp.float32) + b1_ref[...],
        0.0)                                              # (36, 16)

    # ---- maxpool 2x2 ------------------------------------------------------------------
    pool = {}
    for pi in range(3):
        for pj in range(3):
            def row(di, dj, _pi=pi, _pj=pj):
                return (2 * _pi + di) * 6 + (2 * _pj + dj)
            r00, r01, r10, r11 = row(0, 0), row(0, 1), row(1, 0), row(1, 1)
            pool[(pi, pj)] = jnp.maximum(
                jnp.maximum(h1[r00:r00 + 1, :], h1[r01:r01 + 1, :]),
                jnp.maximum(h1[r10:r10 + 1, :], h1[r11:r11 + 1, :]))   # (1, 16)

    # ---- conv2: 2x2, 16 -> 32 ----------------------------------------------------------
    p2 = jnp.concatenate(
        [jnp.concatenate([pool[(oi, oj)], pool[(oi, oj + 1)],
                          pool[(oi + 1, oj)], pool[(oi + 1, oj + 1)]], axis=1)
         for oi in range(2) for oj in range(2)], axis=0)   # (4, 64)
    h2 = jnp.maximum(
        jnp.dot(p2, w2_ref[...], preferred_element_type=jnp.float32) + b2_ref[...],
        0.0)                                               # (4, 32)

    # ---- conv3: 2x2, 32 -> 64  (spatial 1x1 -> this IS the CHW-flattened feature) ------
    p3 = jnp.concatenate([h2[0:1, :], h2[1:2, :], h2[2:3, :], h2[3:4, :]], axis=1)  # (1,128)
    feat = jnp.maximum(
        jnp.dot(p3, w3_ref[...], preferred_element_type=jnp.float32) + b3_ref[...],
        0.0)                                               # (1, 64)

    # ---- LSTMCell: gate-concatenated 256-wide matmuls (gate order i, f, g, o) ----------
    S = feat.shape[1]
    mem = mem_ref[0]                                       # (1, 2S) = [h | c]
    h_prev = mem[:, 0:S]
    c_prev = mem[:, S:2 * S]
    gates = (jnp.dot(feat, wih_ref[...], preferred_element_type=jnp.float32)
             + jnp.dot(h_prev, whh_ref[...], preferred_element_type=jnp.float32)
             + blstm_ref[...])                             # (1, 4S)
    i_g = jax.nn.sigmoid(gates[:, 0 * S:1 * S])
    f_g = jax.nn.sigmoid(gates[:, 1 * S:2 * S])
    g_g = jnp.tanh(gates[:, 2 * S:3 * S])
    o_g = jax.nn.sigmoid(gates[:, 3 * S:4 * S])
    c_new = f_g * c_prev + i_g * g_g
    h_new = o_g * jnp.tanh(c_new)
    memout_ref[0] = jnp.concatenate([h_new, c_new], axis=1)    # lane-dense (1, 2S)

    # ---- fused actor/critic heads: hidden = [actor_hidden(64) | critic_hidden(64)] -----
    hid = jnp.tanh(
        jnp.dot(h_new, w1h_ref[...], preferred_element_type=jnp.float32) + b1h_ref[...])
    out2 = jnp.dot(hid, w2h_ref[...], preferred_element_type=jnp.float32) + b2h_ref[...]
    logits = out2[:, 0:n_act]                              # (1, n_act)
    m = jnp.max(logits, axis=1, keepdims=True)             # log_softmax over real lanes only
    shifted = logits - m
    logp = shifted - jnp.log(jnp.sum(jnp.exp(shifted), axis=1, keepdims=True))
    value = out2[:, n_act:n_act + 1]                       # (1, 1)
    pad = jnp.zeros((1, head_ref.shape[-1] - n_act - 1), jnp.float32)
    head_ref[0] = jnp.concatenate([logp, value, pad], axis=1)   # lane-dense (1, HEAD_PAD)


# ---------------------------------------------------------------------------
# Wrapper
# ---------------------------------------------------------------------------

def forward(params, image, memory, n_actions):
    """Returns (log_probs, value, new_memory).

    TODO(synk): torch.distributions.Categorical has no Pallas equivalent; it is
    represented by its defining log-probabilities (log_softmax of the actor logits).
    """
    B, n, m, z = image.shape
    assert n == 7 and m == 7, "kernel is specialized to the 7x7 MiniGrid observation"
    S = memory.shape[1] // 2                       # semi_memory_size
    img_rows = image.reshape(B, n * m, z)          # metadata-only reshape of the raw input
    mem3d = memory.reshape(B, 1, 2 * S)

    weight_keys = ('w1', 'b1', 'w2', 'b2', 'w3', 'b3',
                   'wih', 'whh', 'blstm', 'w1h', 'b1h', 'w2h', 'b2h')
    weights = [params[k] for k in weight_keys]
    # Full-array, constant-index VMEM blocks: DMA'd once, resident across all grid steps.
    w_specs = [pl.BlockSpec(w.shape, lambda b: (0, 0)) for w in weights]

    head, new_mem = pl.pallas_call(
        functools.partial(_fused_forward_kernel, n_act=n_actions),
        out_shape=(jax.ShapeDtypeStruct((B, 1, HEAD_PAD), jnp.float32),
                   jax.ShapeDtypeStruct((B, 1, 2 * S), jnp.float32)),
        grid=(B,),
        in_specs=[pl.BlockSpec((1, n * m, z), lambda b: (b, 0, 0)),
                  pl.BlockSpec((1, 1, 2 * S), lambda b: (b, 0, 0))] + w_specs,
        out_specs=(pl.BlockSpec((1, 1, HEAD_PAD), lambda b: (b, 0, 0)),
                   pl.BlockSpec((1, 1, 2 * S), lambda b: (b, 0, 0))),
        compiler_params=pltpu.CompilerParams(dimension_semantics=("parallel",)),
    )(img_rows, mem3d, *weights)

    head = head[:, 0, :]
    log_probs = head[:, :n_actions]
    value = head[:, n_actions]
    new_memory = new_mem[:, 0, :]
    return log_probs, value, new_memory


# ---------------------------------------------------------------------------
# Pure-JAX reference (same math) used to validate the fused kernel
# ---------------------------------------------------------------------------

def _forward_reference(params, image, memory, n_actions):
    B = image.shape[0]
    S = memory.shape[1] // 2
    hp = jax.lax.Precision.HIGHEST

    def im2col(x):  # (B, H, W, C) -> (B, H-1, W-1, 4C), patch order (dh, dw, cin)
        return jnp.concatenate([x[:, :-1, :-1, :], x[:, :-1, 1:, :],
                                x[:, 1:, :-1, :], x[:, 1:, 1:, :]], axis=-1)

    h = jax.nn.relu(jnp.dot(im2col(image), params['w1'], precision=hp) + params['b1'])
    Bh, H, W, C = h.shape
    h = jnp.max(h.reshape(Bh, H // 2, 2, W // 2, 2, C), axis=(2, 4))
    h = jax.nn.relu(jnp.dot(im2col(h), params['w2'], precision=hp) + params['b2'])
    h = jax.nn.relu(jnp.dot(im2col(h), params['w3'], precision=hp) + params['b3'])
    x = h.reshape(B, -1)                               # spatial is 1x1 -> just channels

    h_prev, c_prev = memory[:, :S], memory[:, S:]
    g = (jnp.dot(x, params['wih'], precision=hp)
         + jnp.dot(h_prev, params['whh'], precision=hp) + params['blstm'])
    i = jax.nn.sigmoid(g[:, :S])
    f = jax.nn.sigmoid(g[:, S:2 * S])
    gg = jnp.tanh(g[:, 2 * S:3 * S])
    o = jax.nn.sigmoid(g[:, 3 * S:])
    c = f * c_prev + i * gg
    hh = o * jnp.tanh(c)

    hid = jnp.tanh(jnp.dot(hh, params['w1h'], precision=hp) + params['b1h'])
    out2 = jnp.dot(hid, params['w2h'], precision=hp) + params['b2h']
    logp = jax.nn.log_softmax(out2[:, :n_actions], axis=1)
    value = out2[:, n_actions]
    return logp, value, jnp.concatenate([hh, c], axis=1)


# ---------------------------------------------------------------------------
# Deterministic parameter initialization
# ---------------------------------------------------------------------------

def init_params(key, z=3, n_actions=7, hidden=64, head_pad=HEAD_PAD):
    ks = jax.random.split(key, 16)

    def uniform(k, shape, fan_in):
        bound = 1.0 / jnp.sqrt(jnp.float32(fan_in))
        return jax.random.uniform(k, shape, jnp.float32, -bound, bound)

    def normalized_linear(k, out_dim, in_dim):
        # initialize_parameters: normal(0,1), each output row scaled to unit L2 norm
        w = jax.random.normal(k, (out_dim, in_dim), jnp.float32)
        w = w / jnp.sqrt(jnp.sum(w ** 2, axis=1, keepdims=True))
        return w.T                                  # stored as (in, out) for x @ W

    p = {}
    # conv weights as im2col matrices (4*Cin, Cout), rows ordered (dh, dw, cin)
    p['w1'] = uniform(ks[0], (4 * z, 16), 4 * z)
    p['b1'] = uniform(ks[1], (1, 16), 4 * z)
    p['w2'] = uniform(ks[2], (4 * 16, 32), 4 * 16)
    p['b2'] = uniform(ks[3], (1, 32), 4 * 16)
    p['w3'] = uniform(ks[4], (4 * 32, 64), 4 * 32)
    p['b3'] = uniform(ks[5], (1, 64), 4 * 32)
    # LSTMCell(hidden, hidden): gate-concatenated weights (in, 4*hidden), gate order i,f,g,o;
    # combined bias_ih + bias_hh pre-shaped (1, 4*hidden)
    p['wih'] = uniform(ks[6], (hidden, 4 * hidden), hidden)
    p['whh'] = uniform(ks[7], (hidden, 4 * hidden), hidden)
    p['blstm'] = (uniform(ks[8], (1, 4 * hidden), hidden)
                  + uniform(ks[9], (1, 4 * hidden), hidden))
    # fused actor/critic heads: hidden slab = [actor_hidden(64) | critic_hidden(64)]
    wa1 = normalized_linear(ks[10], 64, hidden)       # (hidden, 64)
    wc1 = normalized_linear(ks[12], 64, hidden)       # (hidden, 64)
    p['w1h'] = jnp.concatenate([wa1, wc1], axis=1)    # (hidden, 128)
    p['b1h'] = jnp.zeros((1, 128), jnp.float32)
    wa2 = normalized_linear(ks[11], n_actions, 64)    # (64, n_actions)
    wc2 = normalized_linear(ks[13], 1, 64)            # (64, 1)
    w2h = jnp.zeros((128, head_pad), jnp.float32)     # block-structured, lane-dense
    w2h = w2h.at[0:64, 0:n_actions].set(wa2)
    w2h = w2h.at[64:128, n_actions:n_actions + 1].set(wc2)
    p['w2h'] = w2h
    p['b2h'] = jnp.zeros((1, head_pad), jnp.float32)
    return p


# ---------------------------------------------------------------------------

if __name__ == "__main__":
    key = jax.random.PRNGKey(0)
    pkey, ikey, mkey = jax.random.split(key, 3)

    B, n, m, z, n_actions = 2, 7, 7, 3, 7
    semi_memory = ((n - 1) // 2 - 2) * ((m - 1) // 2 - 2) * 64    # = 64

    params = init_params(pkey, z=z, n_actions=n_actions, hidden=semi_memory)
    image = jax.random.uniform(ikey, (B, n, m, z), jnp.float32)           # obs.image (NHWC)
    memory = 0.1 * jax.random.normal(mkey, (B, 2 * semi_memory), jnp.float32)

    log_probs, value, new_memory = forward(params, image, memory, n_actions)
    jax.block_until_ready((log_probs, value, new_memory))

    assert log_probs.shape == (B, n_actions)
    assert value.shape == (B,)
    assert new_memory.shape == (B, 2 * semi_memory)
    assert bool(jnp.all(jnp.isfinite(log_probs)))
    # log-softmax rows must sum to 1 in prob space
    assert bool(jnp.allclose(jnp.sum(jnp.exp(log_probs), axis=1), 1.0, atol=1e-5))

    # cross-check the fused kernel against a pure-JAX reference of the same math
    ref_lp, ref_v, ref_mem = _forward_reference(params, image, memory, n_actions)
    assert bool(jnp.allclose(log_probs, ref_lp, atol=2e-2, rtol=2e-2))
    assert bool(jnp.allclose(value, ref_v, atol=2e-2, rtol=2e-2))
    assert bool(jnp.allclose(new_memory, ref_mem, atol=2e-2, rtol=2e-2))

    print("KERNEL_OK")
</pallas_src>

<mosaic_0001>
module attributes {stable_mosaic.version = 11 : i64} {
  func.func @_fused_forward_kernel(%arg0: i32, %arg1: memref<1x49x3xf32, #tpu.memory_space<vmem>>, %arg2: memref<1x1x128xf32, #tpu.memory_space<vmem>>, %arg3: memref<12x16xf32, #tpu.memory_space<vmem>>, %arg4: memref<1x16xf32, #tpu.memory_space<vmem>>, %arg5: memref<64x32xf32, #tpu.memory_space<vmem>>, %arg6: memref<1x32xf32, #tpu.memory_space<vmem>>, %arg7: memref<128x64xf32, #tpu.memory_space<vmem>>, %arg8: memref<1x64xf32, #tpu.memory_space<vmem>>, %arg9: memref<64x256xf32, #tpu.memory_space<vmem>>, %arg10: memref<64x256xf32, #tpu.memory_space<vmem>>, %arg11: memref<1x256xf32, #tpu.memory_space<vmem>>, %arg12: memref<64x128xf32, #tpu.memory_space<vmem>>, %arg13: memref<1x128xf32, #tpu.memory_space<vmem>>, %arg14: memref<128x128xf32, #tpu.memory_space<vmem>>, %arg15: memref<1x128xf32, #tpu.memory_space<vmem>>, %arg16: memref<1x1x128xf32, #tpu.memory_space<vmem>>, %arg17: memref<1x1x128xf32, #tpu.memory_space<vmem>>) attributes {dimension_semantics = [#tpu.dimension_semantics<parallel>], iteration_bounds = array<i64: 2>, scalar_prefetch = 0 : i64, scratch_operands = 0 : i64, tpu.core_type = #tpu.core_type<tc>, window_params = [{transform_indices = @transform_0, window_bounds = array<i64: 1, 49, 3>}, {transform_indices = @transform_1, window_bounds = array<i64: 1, 1, 128>}, {pipeline_mode = #tpu.pipeline_mode<synchronous>, transform_indices = @transform_2, window_bounds = array<i64: 12, 16>}, {pipeline_mode = #tpu.pipeline_mode<synchronous>, transform_indices = @transform_3, window_bounds = array<i64: 1, 16>}, {pipeline_mode = #tpu.pipeline_mode<synchronous>, transform_indices = @transform_4, window_bounds = array<i64: 64, 32>}, {pipeline_mode = #tpu.pipeline_mode<synchronous>, transform_indices = @transform_5, window_bounds = array<i64: 1, 32>}, {pipeline_mode = #tpu.pipeline_mode<synchronous>, transform_indices = @transform_6, window_bounds = array<i64: 128, 64>}, {pipeline_mode = #tpu.pipeline_mode<synchronous>, transform_indices = @transform_7, window_bounds = array<i64: 1, 64>}, {pipeline_mode = #tpu.pipeline_mode<synchronous>, transform_indices = @transform_8, window_bounds = array<i64: 64, 256>}, {pipeline_mode = #tpu.pipeline_mode<synchronous>, transform_indices = @transform_9, window_bounds = array<i64: 64, 256>}, {pipeline_mode = #tpu.pipeline_mode<synchronous>, transform_indices = @transform_10, window_bounds = array<i64: 1, 256>}, {pipeline_mode = #tpu.pipeline_mode<synchronous>, transform_indices = @transform_11, window_bounds = array<i64: 64, 128>}, {pipeline_mode = #tpu.pipeline_mode<synchronous>, transform_indices = @transform_12, window_bounds = array<i64: 1, 128>}, {pipeline_mode = #tpu.pipeline_mode<synchronous>, transform_indices = @transform_13, window_bounds = array<i64: 128, 128>}, {pipeline_mode = #tpu.pipeline_mode<synchronous>, transform_indices = @transform_14, window_bounds = array<i64: 1, 128>}, {transform_indices = @transform_15, window_bounds = array<i64: 1, 1, 128>}, {transform_indices = @transform_16, window_bounds = array<i64: 1, 1, 128>}]} {
    %c0 = arith.constant 0 : index
    %c0_0 = arith.constant 0 : index
    %c0_1 = arith.constant 0 : index
    %0 = vector.load %arg1[%c0, %c0_0, %c0_1] : memref<1x49x3xf32, #tpu.memory_space<vmem>>, vector<1x49x3xf32>
    %1 = vector.shape_cast %0 : vector<1x49x3xf32> to vector<49x3xf32>
    %2 = vector.extract_strided_slice %1 {offsets = [0, 0], sizes = [6, 3], strides = [1, 1]} : vector<49x3xf32> to vector<6x3xf32>
    %3 = vector.extract_strided_slice %1 {offsets = [1, 0], sizes = [6, 3], strides = [1, 1]} : vector<49x3xf32> to vector<6x3xf32>
    %4 = vector.extract_strided_slice %1 {offsets = [7, 0], sizes = [6, 3], strides = [1, 1]} : vector<49x3xf32> to vector<6x3xf32>
    %5 = vector.extract_strided_slice %1 {offsets = [8, 0], sizes = [6, 3], strides = [1, 1]} : vector<49x3xf32> to vector<6x3xf32>
    %6 = tpu.concatenate %2, %3, %4, %5 in 1 : vector<6x3xf32>, vector<6x3xf32>, vector<6x3xf32>, vector<6x3xf32> -> vector<6x12xf32>
    %7 = vector.extract_strided_slice %1 {offsets = [7, 0], sizes = [6, 3], strides = [1, 1]} : vector<49x3xf32> to vector<6x3xf32>
    %8 = vector.extract_strided_slice %1 {offsets = [8, 0], sizes = [6, 3], strides = [1, 1]} : vector<49x3xf32> to vector<6x3xf32>
    %9 = vector.extract_strided_slice %1 {offsets = [14, 0], sizes = [6, 3], strides = [1, 1]} : vector<49x3xf32> to vector<6x3xf32>
    %10 = vector.extract_strided_slice %1 {offsets = [15, 0], sizes = [6, 3], strides = [1, 1]} : vector<49x3xf32> to vector<6x3xf32>
    %11 = tpu.concatenate %7, %8, %9, %10 in 1 : vector<6x3xf32>, vector<6x3xf32>, vector<6x3xf32>, vector<6x3xf32> -> vector<6x12xf32>
    %12 = vector.extract_strided_slice %1 {offsets = [14, 0], sizes = [6, 3], strides = [1, 1]} : vector<49x3xf32> to vector<6x3xf32>
    %13 = vector.extract_strided_slice %1 {offsets = [15, 0], sizes = [6, 3], strides = [1, 1]} : vector<49x3xf32> to vector<6x3xf32>
    %14 = vector.extract_strided_slice %1 {offsets = [21, 0], sizes = [6, 3], strides = [1, 1]} : vector<49x3xf32> to vector<6x3xf32>
    %15 = vector.extract_strided_slice %1 {offsets = [22, 0], sizes = [6, 3], strides = [1, 1]} : vector<49x3xf32> to vector<6x3xf32>
    %16 = tpu.concatenate %12, %13, %14, %15 in 1 : vector<6x3xf32>, vector<6x3xf32>, vector<6x3xf32>, vector<6x3xf32> -> vector<6x12xf32>
    %17 = vector.extract_strided_slice %1 {offsets = [21, 0], sizes = [6, 3], strides = [1, 1]} : vector<49x3xf32> to vector<6x3xf32>
    %18 = vector.extract_strided_slice %1 {offsets = [22, 0], sizes = [6, 3], strides = [1, 1]} : vector<49x3xf32> to vector<6x3xf32>
    %19 = vector.extract_strided_slice %1 {offsets = [28, 0], sizes = [6, 3], strides = [1, 1]} : vector<49x3xf32> to vector<6x3xf32>
    %20 = vector.extract_strided_slice %1 {offsets = [29, 0], sizes = [6, 3], strides = [1, 1]} : vector<49x3xf32> to vector<6x3xf32>
    %21 = tpu.concatenate %17, %18, %19, %20 in 1 : vector<6x3xf32>, vector<6x3xf32>, vector<6x3xf32>, vector<6x3xf32> -> vector<6x12xf32>
    %22 = vector.extract_strided_slice %1 {offsets = [28, 0], sizes = [6, 3], strides = [1, 1]} : vector<49x3xf32> to vector<6x3xf32>
    %23 = vector.extract_strided_slice %1 {offsets = [29, 0], sizes = [6, 3], strides = [1, 1]} : vector<49x3xf32> to vector<6x3xf32>
    %24 = vector.extract_strided_slice %1 {offsets = [35, 0], sizes = [6, 3], strides = [1, 1]} : vector<49x3xf32> to vector<6x3xf32>
    %25 = vector.extract_strided_slice %1 {offsets = [36, 0], sizes = [6, 3], strides = [1, 1]} : vector<49x3xf32> to vector<6x3xf32>
    %26 = tpu.concatenate %22, %23, %24, %25 in 1 : vector<6x3xf32>, vector<6x3xf32>, vector<6x3xf32>, vector<6x3xf32> -> vector<6x12xf32>
    %27 = vector.extract_strided_slice %1 {offsets = [35, 0], sizes = [6, 3], strides = [1, 1]} : vector<49x3xf32> to vector<6x3xf32>
    %28 = vector.extract_strided_slice %1 {offsets = [36, 0], sizes = [6, 3], strides = [1, 1]} : vector<49x3xf32> to vector<6x3xf32>
    %29 = vector.extract_strided_slice %1 {offsets = [42, 0], sizes = [6, 3], strides = [1, 1]} : vector<49x3xf32> to vector<6x3xf32>
    %30 = vector.extract_strided_slice %1 {offsets = [43, 0], sizes = [6, 3], strides = [1, 1]} : vector<49x3xf32> to vector<6x3xf32>
    %31 = tpu.concatenate %27, %28, %29, %30 in 1 : vector<6x3xf32>, vector<6x3xf32>, vector<6x3xf32>, vector<6x3xf32> -> vector<6x12xf32>
    %32 = tpu.concatenate %6, %11, %16, %21, %26, %31 in 0 : vector<6x12xf32>, vector<6x12xf32>, vector<6x12xf32>, vector<6x12xf32>, vector<6x12xf32>, vector<6x12xf32> -> vector<36x12xf32>
    %c0_2 = arith.constant 0 : index
    %c0_3 = arith.constant 0 : index
    %33 = vector.load %arg3[%c0_2, %c0_3] : memref<12x16xf32, #tpu.memory_space<vmem>>, vector<12x16xf32>
    %cst = arith.constant dense<0.000000e+00> : vector<36x16xf32>
    %34 = tpu.matmul %32, %33, %cst {dimension_numbers = #tpu.dot_dimension_numbers<[1], [0], [0], [1], [0, 0, 1, 1], [], []>} : vector<36x12xf32>, vector<12x16xf32>, vector<36x16xf32> -> vector<36x16xf32>
    %c0_4 = arith.constant 0 : index
    %c0_5 = arith.constant 0 : index
    %35 = vector.load %arg4[%c0_4, %c0_5] : memref<1x16xf32, #tpu.memory_space<vmem>>, vector<1x16xf32>
    %36 = vector.broadcast %35 : vector<1x16xf32> to vector<36x16xf32>
    %37 = arith.addf %34, %36 : vector<36x16xf32>
    %cst_6 = arith.constant 0.000000e+00 : f32
    %38 = vector.broadcast %cst_6 : f32 to vector<36x16xf32>
    %39 = arith.maximumf %37, %38 : vector<36x16xf32>
    %40 = vector.extract_strided_slice %39 {offsets = [0, 0], sizes = [1, 16], strides = [1, 1]} : vector<36x16xf32> to vector<1x16xf32>
    %41 = vector.extract_strided_slice %39 {offsets = [1, 0], sizes = [1, 16], strides = [1, 1]} : vector<36x16xf32> to vector<1x16xf32>
    %42 = arith.maximumf %40, %41 : vector<1x16xf32>
    %43 = vector.extract_strided_slice %39 {offsets = [6, 0], sizes = [1, 16], strides = [1, 1]} : vector<36x16xf32> to vector<1x16xf32>
    %44 = vector.extract_strided_slice %39 {offsets = [7, 0], sizes = [1, 16], strides = [1, 1]} : vector<36x16xf32> to vector<1x16xf32>
    %45 = arith.maximumf %43, %44 : vector<1x16xf32>
    %46 = arith.maximumf %42, %45 : vector<1x16xf32>
    %47 = vector.extract_strided_slice %39 {offsets = [2, 0], sizes = [1, 16], strides = [1, 1]} : vector<36x16xf32> to vector<1x16xf32>
    %48 = vector.extract_strided_slice %39 {offsets = [3, 0], sizes = [1, 16], strides = [1, 1]} : vector<36x16xf32> to vector<1x16xf32>
    %49 = arith.maximumf %47, %48 : vector<1x16xf32>
    %50 = vector.extract_strided_slice %39 {offsets = [8, 0], sizes = [1, 16], strides = [1, 1]} : vector<36x16xf32> to vector<1x16xf32>
    %51 = vector.extract_strided_slice %39 {offsets = [9, 0], sizes = [1, 16], strides = [1, 1]} : vector<36x16xf32> to vector<1x16xf32>
    %52 = arith.maximumf %50, %51 : vector<1x16xf32>
    %53 = arith.maximumf %49, %52 : vector<1x16xf32>
    %54 = vector.extract_strided_slice %39 {offsets = [4, 0], sizes = [1, 16], strides = [1, 1]} : vector<36x16xf32> to vector<1x16xf32>
    %55 = vector.extract_strided_slice %39 {offsets = [5, 0], sizes = [1, 16], strides = [1, 1]} : vector<36x16xf32> to vector<1x16xf32>
    %56 = arith.maximumf %54, %55 : vector<1x16xf32>
    %57 = vector.extract_strided_slice %39 {offsets = [10, 0], sizes = [1, 16], strides = [1, 1]} : vector<36x16xf32> to vector<1x16xf32>
    %58 = vector.extract_strided_slice %39 {offsets = [11, 0], sizes = [1, 16], strides = [1, 1]} : vector<36x16xf32> to vector<1x16xf32>
    %59 = arith.maximumf %57, %58 : vector<1x16xf32>
    %60 = arith.maximumf %56, %59 : vector<1x16xf32>
    %61 = vector.extract_strided_slice %39 {offsets = [12, 0], sizes = [1, 16], strides = [1, 1]} : vector<36x16xf32> to vector<1x16xf32>
    %62 = vector.extract_strided_slice %39 {offsets = [13, 0], sizes = [1, 16], strides = [1, 1]} : vector<36x16xf32> to vector<1x16xf32>
    %63 = arith.maximumf %61, %62 : vector<1x16xf32>
    %64 = vector.extract_strided_slice %39 {offsets = [18, 0], sizes = [1, 16], strides = [1, 1]} : vector<36x16xf32> to vector<1x16xf32>
    %65 = vector.extract_strided_slice %39 {offsets = [19, 0], sizes = [1, 16], strides = [1, 1]} : vector<36x16xf32> to vector<1x16xf32>
    %66 = arith.maximumf %64, %65 : vector<1x16xf32>
    %67 = arith.maximumf %63, %66 : vector<1x16xf32>
    %68 = vector.extract_strided_slice %39 {offsets = [14, 0], sizes = [1, 16], strides = [1, 1]} : vector<36x16xf32> to vector<1x16xf32>
    %69 = vector.extract_strided_slice %39 {offsets = [15, 0], sizes = [1, 16], strides = [1, 1]} : vector<36x16xf32> to vector<1x16xf32>
    %70 = arith.maximumf %68, %69 : vector<1x16xf32>
    %71 = vector.extract_strided_slice %39 {offsets = [20, 0], sizes = [1, 16], strides = [1, 1]} : vector<36x16xf32> to vector<1x16xf32>
    %72 = vector.extract_strided_slice %39 {offsets = [21, 0], sizes = [1, 16], strides = [1, 1]} : vector<36x16xf32> to vector<1x16xf32>
    %73 = arith.maximumf %71, %72 : vector<1x16xf32>
    %74 = arith.maximumf %70, %73 : vector<1x16xf32>
    %75 = vector.extract_strided_slice %39 {offsets = [16, 0], sizes = [1, 16], strides = [1, 1]} : vector<36x16xf32> to vector<1x16xf32>
    %76 = vector.extract_strided_slice %39 {offsets = [17, 0], sizes = [1, 16], strides = [1, 1]} : vector<36x16xf32> to vector<1x16xf32>
    %77 = arith.maximumf %75, %76 : vector<1x16xf32>
    %78 = vector.extract_strided_slice %39 {offsets = [22, 0], sizes = [1, 16], strides = [1, 1]} : vector<36x16xf32> to vector<1x16xf32>
    %79 = vector.extract_strided_slice %39 {offsets = [23, 0], sizes = [1, 16], strides = [1, 1]} : vector<36x16xf32> to vector<1x16xf32>
    %80 = arith.maximumf %78, %79 : vector<1x16xf32>
    %81 = arith.maximumf %77, %80 : vector<1x16xf32>
    %82 = vector.extract_strided_slice %39 {offsets = [24, 0], sizes = [1, 16], strides = [1, 1]} : vector<36x16xf32> to vector<1x16xf32>
    %83 = vector.extract_strided_slice %39 {offsets = [25, 0], sizes = [1, 16], strides = [1, 1]} : vector<36x16xf32> to vector<1x16xf32>
    %84 = arith.maximumf %82, %83 : vector<1x16xf32>
    %85 = vector.extract_strided_slice %39 {offsets = [30, 0], sizes = [1, 16], strides = [1, 1]} : vector<36x16xf32> to vector<1x16xf32>
    %86 = vector.extract_strided_slice %39 {offsets = [31, 0], sizes = [1, 16], strides = [1, 1]} : vector<36x16xf32> to vector<1x16xf32>
    %87 = arith.maximumf %85, %86 : vector<1x16xf32>
    %88 = arith.maximumf %84, %87 : vector<1x16xf32>
    %89 = vector.extract_strided_slice %39 {offsets = [26, 0], sizes = [1, 16], strides = [1, 1]} : vector<36x16xf32> to vector<1x16xf32>
    %90 = vector.extract_strided_slice %39 {offsets = [27, 0], sizes = [1, 16], strides = [1, 1]} : vector<36x16xf32> to vector<1x16xf32>
    %91 = arith.maximumf %89, %90 : vector<1x16xf32>
    %92 = vector.extract_strided_slice %39 {offsets = [32, 0], sizes = [1, 16], strides = [1, 1]} : vector<36x16xf32> to vector<1x16xf32>
    %93 = vector.extract_strided_slice %39 {offsets = [33, 0], sizes = [1, 16], strides = [1, 1]} : vector<36x16xf32> to vector<1x16xf32>
    %94 = arith.maximumf %92, %93 : vector<1x16xf32>
    %95 = arith.maximumf %91, %94 : vector<1x16xf32>
    %96 = vector.extract_strided_slice %39 {offsets = [28, 0], sizes = [1, 16], strides = [1, 1]} : vector<36x16xf32> to vector<1x16xf32>
    %97 = vector.extract_strided_slice %39 {offsets = [29, 0], sizes = [1, 16], strides = [1, 1]} : vector<36x16xf32> to vector<1x16xf32>
    %98 = arith.maximumf %96, %97 : vector<1x16xf32>
    %99 = vector.extract_strided_slice %39 {offsets = [34, 0], sizes = [1, 16], strides = [1, 1]} : vector<36x16xf32> to vector<1x16xf32>
    %100 = vector.extract_strided_slice %39 {offsets = [35, 0], sizes = [1, 16], strides = [1, 1]} : vector<36x16xf32> to vector<1x16xf32>
    %101 = arith.maximumf %99, %100 : vector<1x16xf32>
    %102 = arith.maximumf %98, %101 : vector<1x16xf32>
    %103 = tpu.concatenate %46, %53, %67, %74 in 1 : vector<1x16xf32>, vector<1x16xf32>, vector<1x16xf32>, vector<1x16xf32> -> vector<1x64xf32>
    %104 = tpu.concatenate %53, %60, %74, %81 in 1 : vector<1x16xf32>, vector<1x16xf32>, vector<1x16xf32>, vector<1x16xf32> -> vector<1x64xf32>
    %105 = tpu.concatenate %67, %74, %88, %95 in 1 : vector<1x16xf32>, vector<1x16xf32>, vector<1x16xf32>, vector<1x16xf32> -> vector<1x64xf32>
    %106 = tpu.concatenate %74, %81, %95, %102 in 1 : vector<1x16xf32>, vector<1x16xf32>, vector<1x16xf32>, vector<1x16xf32> -> vector<1x64xf32>
    %107 = tpu.concatenate %103, %104, %105, %106 in 0 : vector<1x64xf32>, vector<1x64xf32>, vector<1x64xf32>, vector<1x64xf32> -> vector<4x64xf32>
    %c0_7 = arith.constant 0 : index
    %c0_8 = arith.constant 0 : index
    %108 = vector.load %arg5[%c0_7, %c0_8] : memref<64x32xf32, #tpu.memory_space<vmem>>, vector<64x32xf32>
    %cst_9 = arith.constant dense<0.000000e+00> : vector<4x32xf32>
    %109 = tpu.matmul %107, %108, %cst_9 {dimension_numbers = #tpu.dot_dimension_numbers<[1], [0], [0], [1], [0, 0, 1, 1], [], []>} : vector<4x64xf32>, vector<64x32xf32>, vector<4x32xf32> -> vector<4x32xf32>
    %c0_10 = arith.constant 0 : index
    %c0_11 = arith.constant 0 : index
    %110 = vector.load %arg6[%c0_10, %c0_11] : memref<1x32xf32, #tpu.memory_space<vmem>>, vector<1x32xf32>
    %111 = vector.broadcast %110 : vector<1x32xf32> to vector<4x32xf32>
    %112 = arith.addf %109, %111 : vector<4x32xf32>
    %cst_12 = arith.constant 0.000000e+00 : f32
    %113 = vector.broadcast %cst_12 : f32 to vector<4x32xf32>
    %114 = arith.maximumf %112, %113 : vector<4x32xf32>
    %115 = vector.extract_strided_slice %114 {offsets = [0, 0], sizes = [1, 32], strides = [1, 1]} : vector<4x32xf32> to vector<1x32xf32>
    %116 = vector.extract_strided_slice %114 {offsets = [1, 0], sizes = [1, 32], strides = [1, 1]} : vector<4x32xf32> to vector<1x32xf32>
    %117 = vector.extract_strided_slice %114 {offsets = [2, 0], sizes = [1, 32], strides = [1, 1]} : vector<4x32xf32> to vector<1x32xf32>
    %118 = vector.extract_strided_slice %114 {offsets = [3, 0], sizes = [1, 32], strides = [1, 1]} : vector<4x32xf32> to vector<1x32xf32>
    %119 = tpu.concatenate %115, %116, %117, %118 in 1 : vector<1x32xf32>, vector<1x32xf32>, vector<1x32xf32>, vector<1x32xf32> -> vector<1x128xf32>
    %c0_13 = arith.constant 0 : index
    %c0_14 = arith.constant 0 : index
    %120 = vector.load %arg7[%c0_13, %c0_14] : memref<128x64xf32, #tpu.memory_space<vmem>>, vector<128x64xf32>
    %cst_15 = arith.constant dense<0.000000e+00> : vector<1x64xf32>
    %121 = tpu.matmul %119, %120, %cst_15 {dimension_numbers = #tpu.dot_dimension_numbers<[1], [0], [0], [1], [0, 0, 1, 1], [], []>} : vector<1x128xf32>, vector<128x64xf32>, vector<1x64xf32> -> vector<1x64xf32>
    %c0_16 = arith.constant 0 : index
    %c0_17 = arith.constant 0 : index
    %122 = vector.load %arg8[%c0_16, %c0_17] : memref<1x64xf32, #tpu.memory_space<vmem>>, vector<1x64xf32>
    %123 = arith.addf %121, %122 : vector<1x64xf32>
    %cst_18 = arith.constant 0.000000e+00 : f32
    %124 = vector.broadcast %cst_18 : f32 to vector<1x64xf32>
    %125 = arith.maximumf %123, %124 : vector<1x64xf32>
    %c0_19 = arith.constant 0 : index
    %c0_20 = arith.constant 0 : index
    %c0_21 = arith.constant 0 : index
    %126 = vector.load %arg2[%c0_19, %c0_20, %c0_21] : memref<1x1x128xf32, #tpu.memory_space<vmem>>, vector<1x1x128xf32>
    %127 = vector.shape_cast %126 : vector<1x1x128xf32> to vector<1x128xf32>
    %128 = vector.extract_strided_slice %127 {offsets = [0, 0], sizes = [1, 64], strides = [1, 1]} : vector<1x128xf32> to vector<1x64xf32>
    %129 = vector.extract_strided_slice %127 {offsets = [0, 64], sizes = [1, 64], strides = [1, 1]} : vector<1x128xf32> to vector<1x64xf32>
    %c0_22 = arith.constant 0 : index
    %c0_23 = arith.constant 0 : index
    %130 = vector.load %arg9[%c0_22, %c0_23] : memref<64x256xf32, #tpu.memory_space<vmem>>, vector<64x256xf32>
    %cst_24 = arith.constant dense<0.000000e+00> : vector<1x256xf32>
    %131 = tpu.matmul %125, %130, %cst_24 {dimension_numbers = #tpu.dot_dimension_numbers<[1], [0], [0], [1], [0, 0, 1, 1], [], []>} : vector<1x64xf32>, vector<64x256xf32>, vector<1x256xf32> -> vector<1x256xf32>
    %c0_25 = arith.constant 0 : index
    %c0_26 = arith.constant 0 : index
    %132 = vector.load %arg10[%c0_25, %c0_26] : memref<64x256xf32, #tpu.memory_space<vmem>>, vector<64x256xf32>
    %cst_27 = arith.constant dense<0.000000e+00> : vector<1x256xf32>
    %133 = tpu.matmul %128, %132, %cst_27 {dimension_numbers = #tpu.dot_dimension_numbers<[1], [0], [0], [1], [0, 0, 1, 1], [], []>} : vector<1x64xf32>, vector<64x256xf32>, vector<1x256xf32> -> vector<1x256xf32>
    %134 = arith.addf %131, %133 : vector<1x256xf32>
    %c0_28 = arith.constant 0 : index
    %c0_29 = arith.constant 0 : index
    %135 = vector.load %arg11[%c0_28, %c0_29] : memref<1x256xf32, #tpu.memory_space<vmem>>, vector<1x256xf32>
    %136 = arith.addf %134, %135 : vector<1x256xf32>
    %137 = vector.extract_strided_slice %136 {offsets = [0, 0], sizes = [1, 64], strides = [1, 1]} : vector<1x256xf32> to vector<1x64xf32>
    %138 = arith.negf %137 : vector<1x64xf32>
    %139 = math.exp %138 : vector<1x64xf32>
    %cst_30 = arith.constant 1.000000e+00 : f32
    %140 = vector.broadcast %cst_30 : f32 to vector<1x64xf32>
    %141 = arith.addf %140, %139 : vector<1x64xf32>
    %142 = arith.divf %140, %141 : vector<1x64xf32>
    %143 = vector.extract_strided_slice %136 {offsets = [0, 64], sizes = [1, 64], strides = [1, 1]} : vector<1x256xf32> to vector<1x64xf32>
    %144 = arith.negf %143 : vector<1x64xf32>
    %145 = math.exp %144 : vector<1x64xf32>
    %cst_31 = arith.constant 1.000000e+00 : f32
    %146 = vector.broadcast %cst_31 : f32 to vector<1x64xf32>
    %147 = arith.addf %146, %145 : vector<1x64xf32>
    %148 = arith.divf %146, %147 : vector<1x64xf32>
    %149 = vector.extract_strided_slice %136 {offsets = [0, 128], sizes = [1, 64], strides = [1, 1]} : vector<1x256xf32> to vector<1x64xf32>
    %150 = math.tanh %149 : vector<1x64xf32>
    %151 = vector.extract_strided_slice %136 {offsets = [0, 192], sizes = [1, 64], strides = [1, 1]} : vector<1x256xf32> to vector<1x64xf32>
    %152 = arith.negf %151 : vector<1x64xf32>
    %153 = math.exp %152 : vector<1x64xf32>
    %cst_32 = arith.constant 1.000000e+00 : f32
    %154 = vector.broadcast %cst_32 : f32 to vector<1x64xf32>
    %155 = arith.addf %154, %153 : vector<1x64xf32>
    %156 = arith.divf %154, %155 : vector<1x64xf32>
    %157 = arith.mulf %148, %129 : vector<1x64xf32>
    %158 = arith.mulf %142, %150 : vector<1x64xf32>
    %159 = arith.addf %157, %158 : vector<1x64xf32>
    %160 = math.tanh %159 : vector<1x64xf32>
    %161 = arith.mulf %156, %160 : vector<1x64xf32>
    %162 = tpu.concatenate %161, %159 in 1 : vector<1x64xf32>, vector<1x64xf32> -> vector<1x128xf32>
    %c0_33 = arith.constant 0 : index
    %c0_34 = arith.constant 0 : index
    %c0_35 = arith.constant 0 : index
    %163 = vector.load %arg17[%c0_33, %c0_34, %c0_35] : memref<1x1x128xf32, #tpu.memory_space<vmem>>, vector<1x1x128xf32>
    %164 = vector.shape_cast %163 : vector<1x1x128xf32> to vector<1x128xf32>
    %165 = vector.shape_cast %162 : vector<1x128xf32> to vector<1x1x128xf32>
    tpu.vector_store %arg17[%c0_33, %c0_34, %c0_35], %165 {strides = array<i32>} : memref<1x1x128xf32, #tpu.memory_space<vmem>>, vector<1x1x128xf32>,
    %c0_36 = arith.constant 0 : index
    %c0_37 = arith.constant 0 : index
    %166 = vector.load %arg12[%c0_36, %c0_37] : memref<64x128xf32, #tpu.memory_space<vmem>>, vector<64x128xf32>
    %cst_38 = arith.constant dense<0.000000e+00> : vector<1x128xf32>
    %167 = tpu.matmul %161, %166, %cst_38 {dimension_numbers = #tpu.dot_dimension_numbers<[1], [0], [0], [1], [0, 0, 1, 1], [], []>} : vector<1x64xf32>, vector<64x128xf32>, vector<1x128xf32> -> vector<1x128xf32>
    %c0_39 = arith.constant 0 : index
    %c0_40 = arith.constant 0 : index
    %168 = vector.load %arg13[%c0_39, %c0_40] : memref<1x128xf32, #tpu.memory_space<vmem>>, vector<1x128xf32>
    %169 = arith.addf %167, %168 : vector<1x128xf32>
    %170 = math.tanh %169 : vector<1x128xf32>
    %c0_41 = arith.constant 0 : index
    %c0_42 = arith.constant 0 : index
    %171 = vector.load %arg14[%c0_41, %c0_42] : memref<128x128xf32, #tpu.memory_space<vmem>>, vector<128x128xf32>
    %cst_43 = arith.constant dense<0.000000e+00> : vector<1x128xf32>
    %172 = tpu.matmul %170, %171, %cst_43 {dimension_numbers = #tpu.dot_dimension_numbers<[1], [0], [0], [1], [0, 0, 1, 1], [], []>} : vector<1x128xf32>, vector<128x128xf32>, vector<1x128xf32> -> vector<1x128xf32>
    %c0_44 = arith.constant 0 : index
    %c0_45 = arith.constant 0 : index
    %173 = vector.load %arg15[%c0_44, %c0_45] : memref<1x128xf32, #tpu.memory_space<vmem>>, vector<1x128xf32>
    %174 = arith.addf %172, %173 : vector<1x128xf32>
    %175 = vector.extract_strided_slice %174 {offsets = [0, 0], sizes = [1, 7], strides = [1, 1]} : vector<1x128xf32> to vector<1x7xf32>
    %cst_46 = arith.constant dense<0xFF800000> : vector<1xf32>
    %176 = vector.multi_reduction <maximumf>, %175, %cst_46 [1] : vector<1x7xf32> to vector<1xf32>
    %177 = vector.shape_cast %176 : vector<1xf32> to vector<1x1xf32>
    %178 = vector.broadcast %177 : vector<1x1xf32> to vector<1x7xf32>
    %179 = arith.subf %175, %178 : vector<1x7xf32>
    %180 = math.exp %179 : vector<1x7xf32>
    %cst_47 = arith.constant dense<0.000000e+00> : vector<1xf32>
    %181 = vector.multi_reduction <add>, %180, %cst_47 [1] : vector<1x7xf32> to vector<1xf32>
    %182 = vector.shape_cast %181 : vector<1xf32> to vector<1x1xf32>
    %183 = math.log %182 : vector<1x1xf32>
    %184 = vector.broadcast %183 : vector<1x1xf32> to vector<1x7xf32>
    %185 = arith.subf %179, %184 : vector<1x7xf32>
    %186 = vector.extract_strided_slice %174 {offsets = [0, 7], sizes = [1, 1], strides = [1, 1]} : vector<1x128xf32> to vector<1x1xf32>
    %cst_48 = arith.constant 0.000000e+00 : f32
    %187 = vector.broadcast %cst_48 : f32 to vector<1x120xf32>
    %188 = tpu.concatenate %185, %186, %187 in 1 : vector<1x7xf32>, vector<1x1xf32>, vector<1x120xf32> -> vector<1x128xf32>
    %c0_49 = arith.constant 0 : index
    %c0_50 = arith.constant 0 : index
    %c0_51 = arith.constant 0 : index
    %189 = vector.load %arg16[%c0_49, %c0_50, %c0_51] : memref<1x1x128xf32, #tpu.memory_space<vmem>>, vector<1x1x128xf32>
    %190 = vector.shape_cast %189 : vector<1x1x128xf32> to vector<1x128xf32>
    %191 = vector.shape_cast %188 : vector<1x128xf32> to vector<1x1x128xf32>
    tpu.vector_store %arg16[%c0_49, %c0_50, %c0_51], %191 {strides = array<i32>} : memref<1x1x128xf32, #tpu.memory_space<vmem>>, vector<1x1x128xf32>,
    return
  }
  func.func @transform_0(%arg0: i32) -> (i32, i32, i32) {
    %c0_i32 = arith.constant 0 : i32
    %c0_i32_0 = arith.constant 0 : i32
    %c0_i32_1 = arith.constant 0 : i32
    return %arg0, %c0_i32, %c0_i32_0 : i32, i32, i32
  }
  func.func @transform_1(%arg0: i32) -> (i32, i32, i32) {
    %c0_i32 = arith.constant 0 : i32
    %c0_i32_0 = arith.constant 0 : i32
    %c0_i32_1 = arith.constant 0 : i32
    return %arg0, %c0_i32, %c0_i32_0 : i32, i32, i32
  }
  func.func @transform_2(%arg0: i32) -> (i32, i32) {
    %c0_i32 = arith.constant 0 : i32
    %c0_i32_0 = arith.constant 0 : i32
    %c0_i32_1 = arith.constant 0 : i32
    return %c0_i32, %c0_i32_0 : i32, i32
  }
  func.func @transform_3(%arg0: i32) -> (i32, i32) {
    %c0_i32 = arith.constant 0 : i32
    %c0_i32_0 = arith.constant 0 : i32
    %c0_i32_1 = arith.constant 0 : i32
    return %c0_i32, %c0_i32_0 : i32, i32
  }
  func.func @transform_4(%arg0: i32) -> (i32, i32) {
    %c0_i32 = arith.constant 0 : i32
    %c0_i32_0 = arith.constant 0 : i32
    %c0_i32_1 = arith.constant 0 : i32
    return %c0_i32, %c0_i32_0 : i32, i32
  }
  func.func @transform_5(%arg0: i32) -> (i32, i32) {
    %c0_i32 = arith.constant 0 : i32
    %c0_i32_0 = arith.constant 0 : i32
    %c0_i32_1 = arith.constant 0 : i32
    return %c0_i32, %c0_i32_0 : i32, i32
  }
  func.func @transform_6(%arg0: i32) -> (i32, i32) {
    %c0_i32 = arith.constant 0 : i32
    %c0_i32_0 = arith.constant 0 : i32
    %c0_i32_1 = arith.constant 0 : i32
    return %c0_i32, %c0_i32_0 : i32, i32
  }
  func.func @transform_7(%arg0: i32) -> (i32, i32) {
    %c0_i32 = arith.constant 0 : i32
    %c0_i32_0 = arith.constant 0 : i32
    %c0_i32_1 = arith.constant 0 : i32
    return %c0_i32, %c0_i32_0 : i32, i32
  }
  func.func @transform_8(%arg0: i32) -> (i32, i32) {
    %c0_i32 = arith.constant 0 : i32
    %c0_i32_0 = arith.constant 0 : i32
    %c0_i32_1 = arith.constant 0 : i32
    return %c0_i32, %c0_i32_0 : i32, i32
  }
  func.func @transform_9(%arg0: i32) -> (i32, i32) {
    %c0_i32 = arith.constant 0 : i32
    %c0_i32_0 = arith.constant 0 : i32
    %c0_i32_1 = arith.constant 0 : i32
    return %c0_i32, %c0_i32_0 : i32, i32
  }
  func.func @transform_10(%arg0: i32) -> (i32, i32) {
    %c0_i32 = arith.constant 0 : i32
    %c0_i32_0 = arith.constant 0 : i32
    %c0_i32_1 = arith.constant 0 : i32
    return %c0_i32, %c0_i32_0 : i32, i32
  }
  func.func @transform_11(%arg0: i32) -> (i32, i32) {
    %c0_i32 = arith.constant 0 : i32
    %c0_i32_0 = arith.constant 0 : i32
    %c0_i32_1 = arith.constant 0 : i32
    return %c0_i32, %c0_i32_0 : i32, i32
  }
  func.func @transform_12(%arg0: i32) -> (i32, i32) {
    %c0_i32 = arith.constant 0 : i32
    %c0_i32_0 = arith.constant 0 : i32
    %c0_i32_1 = arith.constant 0 : i32
    return %c0_i32, %c0_i32_0 : i32, i32
  }
  func.func @transform_13(%arg0: i32) -> (i32, i32) {
    %c0_i32 = arith.constant 0 : i32
    %c0_i32_0 = arith.constant 0 : i32
    %c0_i32_1 = arith.constant 0 : i32
    return %c0_i32, %c0_i32_0 : i32, i32
  }
  func.func @transform_14(%arg0: i32) -> (i32, i32) {
    %c0_i32 = arith.constant 0 : i32
    %c0_i32_0 = arith.constant 0 : i32
    %c0_i32_1 = arith.constant 0 : i32
    return %c0_i32, %c0_i32_0 : i32, i32
  }
  func.func @transform_15(%arg0: i32) -> (i32, i32, i32) {
    %c0_i32 = arith.constant 0 : i32
    %c0_i32_0 = arith.constant 0 : i32
    %c0_i32_1 = arith.constant 0 : i32
    return %arg0, %c0_i32, %c0_i32_0 : i32, i32, i32
  }
  func.func @transform_16(%arg0: i32) -> (i32, i32, i32) {
    %c0_i32 = arith.constant 0 : i32
    %c0_i32_0 = arith.constant 0 : i32
    %c0_i32_1 = arith.constant 0 : i32
    return %arg0, %c0_i32, %c0_i32_0 : i32, i32, i32
  }
}

</mosaic_0001>

<bundles_post_ra>
// kernel: tpu_custom_call.1
= control target key start
LH: loop header
LB: loop body
LE: loop exit
PB: predicated region body
PF: predicated region fallthrough
CT: control target
= control target key end

     0   :  { %s2454_s0 = inlined_call_operand.vmem [shape: f32[2,49,3], index: 0, kind: input, shape index: {}]   ;;  %s2455_s1 = inlined_call_operand.hbm [shape: f32[2,1,128], index: 1, kind: input, shape index: {}]   ;;  %s2456_s2 = inlined_call_operand.vmem [shape: f32[12,16], index: 2, kind: input, shape index: {}]   ;;  %s2457_s3 = inlined_call_operand.hbm [shape: f32[1,16], index: 3, kind: input, shape index: {}]   ;;  %s2458_s4 = inlined_call_operand.vmem [shape: f32[64,32], index: 4, kind: input, shape index: {}]   ;;  %s2459_s5 = inlined_call_operand.vmem [shape: f32[1,32], index: 5, kind: input, shape index: {}]   ;;  %s2460_s6 = inlined_call_operand.vmem [shape: f32[128,64], index: 6, kind: input, shape index: {}]   ;;  %s2461_s7 = inlined_call_operand.vmem [shape: f32[1,64], index: 7, kind: input, shape index: {}]   ;;  %s2462_s8 = inlined_call_operand.vmem [shape: f32[64,256], index: 8, kind: input, shape index: {}]   ;;  %s2463_s9 = inlined_call_operand.vmem [shape: f32[64,256], index: 9, kind: input, shape index: {}]   ;;  %s2464_s10 = inlined_call_operand.vmem [shape: f32[1,256], index: 10, kind: input, shape index: {}]   ;;  %s2465_s11 = inlined_call_operand.vmem [shape: f32[64,128], index: 11, kind: input, shape index: {}]   ;;  %s2466_s12 = inlined_call_operand.vmem [shape: f32[1,128], index: 12, kind: input, shape index: {}]   ;;  %s2467_s13 = inlined_call_operand.hbm [shape: f32[128,128], index: 13, kind: input, shape index: {}]   ;;  %s2468_s14 = inlined_call_operand.vmem [shape: f32[1,128], index: 14, kind: input, shape index: {}]   ;;  %s2469_s15 = inlined_call_operand.hbm [shape: f32[2,1,128], index: 15, kind: output, shape index: {0}]   ;;  %s2470_s16 = inlined_call_operand.hbm [shape: f32[2,1,128], index: 16, kind: output, shape index: {1}]  }
   0x1   :  { %2477 = sst [smem:[#allocation20_spill]] %s2454_s0 }
   0x2   :  { %2478 = sst [smem:[#allocation21_spill]] %s2457_s3 }
   0x3   :  { %2479 = sst [smem:[#allocation22_spill]] %s2467_s13 }
   0x4   :  { %2480 = sst [smem:[#allocation23_spill]] %s2469_s15 }
   0x5   :  { %22 = vsyncpa [#allocation3], 0 }
   0x6   :  { %24 = vsyncpa [#allocation3 + $0x1], 0 }
   0x7   :  { %25 = vsyncpa [#allocation6], 0 }
   0x8   :  { %26 = vsyncpa [#allocation4], 0 }
   0x9   :  { %28 = vsyncpa [#allocation4 + $0x1], 0 }
   0xa   :  { %29 = vsyncpa [#allocation10], 0 }
   0xb   :  { %31 = vsyncpa [#allocation10 + $0x1], 0  ;;  %s1887_s21 = smov 0   ;;  %s1889_s22 = smov 0  }
   0xc   :  { %s1891_s23 = smov 0   ;;  %s1893_s24 = smov 0  }
   0xd LB: > { %2481 = sst [smem:[#allocation15_spill]] %s1776_s21  ;;  %s1908_s25 = sadd.s32 4294967295, %s1788_s24   ;;  %s1788_s24 = sphi %s1893_s24, %s2498_s24   ;;  %s1784_s23 = sphi %s1891_s23, %s2500_s23   ;;  %s1780_s22 = sphi %s1889_s22, %s2502_s22   ;;  %s1776_s21 = sphi %s1887_s21, %s2501_s21  }
   0xe   : > { %2482 = sst [smem:[#allocation16_spill]] %s1784_s23  ;;  %s1468_s26 = sadd.s32 4294967294, %s1788_s24  }
   0xf   : > { %p83_p0 = scmp.ne.s32.totalorder %s1780_s22, %s1776_s21  ;;  %p84_p1 = scmp.eq.s32.totalorder %s1908_s25, 0 }
  0x10   : > { %p380_p2 = scmp.eq.s32.totalorder %s1908_s25, 1  ;;  %p386_p3 = scmp.eq.s32.totalorder %s1468_s26, 1 }
  0x11   : > { %p1917_p4 = por %p84_p1, %p83_p0  ;;  %p1469_p5 = scmp.ge.s32.totalorder %s1788_s24, 1 }
  0x12   : > { %p1922_p6 = por %p386_p3, %p83_p0  ;;  %p419_p7 = scmp.lt.s32.totalorder %s1788_s24, 3 }
  0x13   : > { %s2486_s3 = sld [smem:[#allocation21_spill]]  ;;  %s1790_s18 = smov [#allocation5]  }
  0x14   : > { %s2484_s28 = scalar_select %p1922_p6, 1, 0 }
  0x15   : > { %p1930_p8 = pnand %p1469_p5, %p419_p7  ;;  %s436_s19 = sshll.u32 %s1790_s18, 4  ;;  %s437_s19 = int_to_ptr.vmem [resolvable:$true] %s436_s19 }
  0x16   : > { %2485 = sst [smem:[#allocation17_spill]] %s2484_s28  ;;  %s1791_s30 = smov [#allocation7]  }
  0x17   : > { %p1508_p10 = pneg %p1930_p8  ;;  %s2488_s13 = sld [smem:[#allocation22_spill]] }
  0x18   : > { %s1792_s18 = smov 128   ;;  %s1793_s28 = smov 8  }
  0x19   : > { %s434_s0 = sshll.u32 %s2486_s3, 4  ;;  %p1509_p11 = pnand %p1508_p10, %p84_p1  ;;  %s435_s0 = int_to_ptr.hbm [resolvable:$true] %s434_s0 }
  0x1a   : > { %s474_s3 = sshll.u32 %s1791_s30, 4  ;;  %s1943_s21 = sadd.s32 1, %s1788_s24   ;;  %s475_s3 = int_to_ptr.vmem [resolvable:$true] %s474_s3 }
  0x1b   : > { %1511 = dma.hbm_to_vmem [thread:$0]  (!%p1509_p11), %s435_s0, 16, %s437_s19, [#allocation6]  }
  0x1c   : > { %2489 = sst [smem:[#allocation18_spill]] %s1943_s21  ;;  %s67_s20 = ssub.s32 %s1788_s24, %s1943_s21 }
  0x1d   : > { %s472_s29 = sshll.u32 %s2488_s13, 4  ;;  %p68_p12 = scmp.eq.s32.totalorder %s67_s20, 0  ;;  %s473_s29 = int_to_ptr.hbm [resolvable:$true] %s472_s29 }
  0x1e   : > { %1514 = dma.hbm_to_vmem [thread:$0]  (!%p1509_p11), %s473_s29, 2048, %s475_s3, [#allocation6], %s1792_s18, %s1792_s18, %s1793_s28  }
  0x1f   : > { %s70_s26 = sadd.s32 1, %s1784_s23  ;;  %p77_p13 = scmp.ne.s32.totalorder %s1784_s23, %s1780_s22 }
  0x20   : > { %p78_p0 = scmp.eq.s32.totalorder %s1788_s24, 0  ;;  %p1528_p7 = scmp.lt.s32.totalorder %s1788_s24, 2 }
  0x21   : > { %s1952_s13 = scalar_select %p68_p12, %s1784_s23, %s70_s26  }
  0x22   : > { %p79_p3 = por %p78_p0, %p77_p13  ;;  %p1956_p5 = por %p380_p2, %p77_p13 }
  0x23   : > { %2490 = sst [smem:[#allocation19_spill]] %s1952_s13  ;;  %s499_s0 = sand.u32 1, %s1784_s23  }
  0x24   : > { %s505_s28 = scalar_lea.hbm %s2455_s1, %s1788_s24  ;;  %s502_s29 = scalar_lea.vmem [#allocation2], %s499_s0 }
  0x25   : > { %s509_s18 = sshll.u32 %s502_s29, 4  ;;  %s507_s20 = sshll.u32 %s505_s28, 4  ;;  %s510_s18 = int_to_ptr.vmem [resolvable:$true] %s509_s18  ;;  %s508_s20 = int_to_ptr.hbm [resolvable:$true] %s507_s20 }
  0x26   : > { %p1966_p10 = pnand %p1528_p7, %p79_p3  ;;  %s500_s13 = scalar_lea.sflag [#allocation3], %s499_s0 }
  0x27   : > { %s1656_s21 = sshra.s32 %s508_s20, 4  ;;  %s1663_s28 = scalar_lea.hbm %s2455_s1, 2  ;;  %s1657_s21 = int_to_ptr.hbm [resolvable:$true] %s1656_s21 }
  0x28   : > { %s1658_s15 = scalar_lea.hbm %s1657_s21, 1  ;;  %p1660_p11 = pneg %p1966_p10 }
  0x29   : > { %p1659_p2 = scmp.ne.s32.totalorder %s1657_s21, %s1658_s15  ;;  %p1664_p0 = scmp.lt.s32.totalorder %s1657_s21, %s2455_s1 }
  0x2a   : > { %p1665_p3 = scmp.lt.s32.totalorder %s1663_s28, %s1658_s15 }
  0x2b   : > { %p1661_p12 = pnand %p1660_p11, %p1659_p2 }
  0x2c   : > { %p1666_p7 = por %p1665_p3, %p1664_p0 }
  0x2d   : > { %p1662_p13 = pneg %p1661_p12 }
  0x2f   : > { %p1667_p9 = pnand %p1666_p7, %p1662_p13 }
  0x31   : > { %1670 = shalt.err (!%p1667_p9)
}
  0x32   : > { %1518 = dma.hbm_to_vmem [thread:$0]  (!%p1966_p10), %s508_s20, 16, %s510_s18, %s500_s13  }
  0x33   : > { %518 = sbr.rel (%p1930_p8) target bundleno = 1812 (0x714), region = 80  ;;  %s1983_s0 = sand.u32 (!%p1930_p8), 1, %s1780_s22  }
  0x34   : > { %s521_s19 = scalar_lea.sflag (!%p1930_p8), [#allocation3], %s1983_s0  ;;  %s523_s3 = scalar_lea.vmem (!%p1930_p8), [#allocation2], %s1983_s0 }
  0x38   : > { %1759 = dma.done.wait (%p1917_p4), %s521_s19, 16  }
  0x39   : > { %1761 = vsyncadd (%p1917_p4), %s521_s19, 4294967280 }
  0x3a   : > { %1763 = dma.done.wait (%p84_p1), [#allocation6], 2064  }
  0x3b   : > { %1765 = vsyncadd (%p84_p1), [#allocation6], 4294965232  ;;  %p590_p8 = scmp.lt.s32.totalorder %s1908_s25, 1  ;;  %s2493_s17 = sld [smem:[#allocation20_spill]]  ;;  %vm608_vm0 = vcmask 1040384   ;;  %vm646_vm1 = vcmask 1046528  }
  0x3c   : > { %s1794_s27 = smov 9   ;;  %s1795_s20 = smov 3   ;;  %vm770_vm2 = vcmask 1043456   ;;  %v788_v28 = vld [vmem:[%s2456_s2 + $0x8] sm:$0xf]  ;;  %v787_v29 = vld [vmem:[%s2456_s2] sm:$0xff] }
  0x3d   : > { %s591_s13 = scalar_select %p590_p8, %s1908_s25, 1  ;;  %1477 = vmatpush.msk.msra.mxu0 %vm770_vm2, %v788_v28  ;;  %vm618_vm3 = vcmask 23552   ;;  %vm620_vm4 = vcmask 48128   ;;  %vm622_vm5 = vcmask 72704   ;;  %vm755_vm6 = vcmask 1045504  }
  0x3e   : > { %s1796_s26 = smov 6   ;;  %vm793_vm7 = vcmask 97280   ;;  %vm763_vm8 = vcmask 1044480   ;;  %vm784_vm9 = vcmask 1041408   ;;  %vm777_vm10 = vcmask 1042432   ;;  %s1798_s21 = smov 48  }
  0x3f   : > { %s1493_s15 = smul.u32 56, %s591_s13  ;;  %826 = vmatpush.msra.mxu0 %v787_v29  ;;  %s1799_s23 = smov 32   ;;  %vm903_vm11 = vcmask 130048   ;;  %vm905_vm12 = vcmask 261120   ;;  %vm907_vm13 = vcmask 392192   ;;  %vm969_vm14 = vcmask 523264  }
  0x40   : > { %vm1009_vm15 = vcmask 785408   ;;  %s1343_s29 = scalar_lea.hbm %s2470_s16, %s1908_s25  ;;  %s1322_s13 = scalar_lea.sflag [#allocation10], %s1983_s0 }
  0x41   : > { %s2000_s18 = scalar_lea.vmem %s2493_s17, %s1493_s15  ;;  %s1797_s15 = smov 16  }
  0x42   : > { %v2003_v0 = vld [vmem:[%s2000_s18 + $0x8] sm:$0xff]  ;;  %v2006_v1 = vld [vmem:[%s2000_s18 + $0x10] sm:$0xff]  ;;  %v2017_v5 = vld [vmem:[%s2000_s18] sm:$0xff] }
  0x43   : > { %615 = vrot.lane.b32.xlu1 %v2003_v0, %s1794_s27  ;;  %v624_v2 = vrot.slane %v2003_v0, 1  ;;  %637 = vrot.lane.b32.xlu2 %v2006_v1, %s1794_s27  ;;  %v610_v3 = vrot.slane %v2003_v0, 7  ;;  %v629_v4 = vrot.slane %v2006_v1, 7  ;;  %v603_v6 = vrot.slane %v2017_v5, 1  ;;  %v2028_v11 = vld [vmem:[%s2000_s18 + $0x18] sm:$0xff]  ;;  %v2044_v17 = vld [vmem:[%s2000_s18 + $0x20] sm:$0xff] }
  0x44   : > { %v647_v8 = vrot.slane %v2006_v1, 1  ;;  %v609_v9 = vrot.slane %v2017_v5, 7  ;;  %v656_v13 = vrot.slane %v2028_v11, 7  ;;  %v673_v15 = vrot.slane %v2028_v11, 1  ;;  %v2055_v22 = vld [vmem:[%s2000_s18 + $0x28] sm:$0xff] }
  0x45   : > { %625 = vrot.lane.b32.xlu0 %v624_v2, %s1795_s20  ;;  %v630_v7 = vsel %vm608_vm0, %v610_v3, %v629_v4  ;;  %v682_v18 = vrot.slane %v2044_v17, 7  ;;  %v699_v19 = vrot.slane %v2044_v17, 1  ;;  %v708_v23 = vrot.slane %v2055_v22, 7  ;;  %v601_v27 = vld [vmem:[%s2000_s18 + $0x30] sm:$0x1]  ;;  %s1706_s18 = scalar_lea.hbm %s2470_s16, 2 }
  0x46   : > { %v648_v10 = vsel %vm646_vm1, %v624_v2, %v647_v8  ;;  %v611_v12 = vsel %vm608_vm0, %v609_v9, %v610_v3  ;;  %v657_v14 = vsel %vm608_vm0, %v629_v4, %v656_v13  ;;  %v674_v16 = vsel %vm646_vm1, %v647_v8, %v673_v15 }
  0x47   : > { %v700_v20 = vsel %vm646_vm1, %v673_v15, %v699_v19  ;;  %v683_v21 = vsel %vm608_vm0, %v656_v13, %v682_v18  ;;  %v709_v24 = vsel %vm608_vm0, %v682_v18, %v708_v23  ;;  %v725_v25 = vrot.slane %v2055_v22, 1 }
  0x49   : > { %v726_v26 = vsel %vm646_vm1, %v699_v19, %v725_v25 }
  0x4b   : > { %633 = vrot.lane.b32.xlu1 %v630_v7, %s1796_s26  ;;  %604 = vrot.lane.b32.xlu2 %v603_v6, %s1795_s20 }
  0x4d   : > { %631 = vrot.lane.b32.xlu0 %v610_v3, %s1796_s26 }
  0x53   : > { %649 = vrot.lane.b32.xlu1 %v648_v10, %s1795_s20  ;;  %651 = vrot.lane.b32.xlu2 %v647_v8, %s1795_s20 }
  0x55   : > { %612 = vrot.lane.b32.xlu0 %v611_v12, %s1796_s26 }
  0x5b   : > { %660 = vrot.lane.b32.xlu1 %v657_v14, %s1796_s26  ;;  %664 = vrot.lane.b32.xlu2 %v2028_v11, %s1794_s27 }
  0x5d   : > { %658 = vrot.lane.b32.xlu0 %v629_v4, %s1796_s26 }
  0x63   : > { %677 = vrot.lane.b32.xlu1 %v673_v15, %s1795_s20  ;;  %684 = vrot.lane.b32.xlu2 %v656_v13, %s1796_s26 }
  0x65   : > { %675 = vrot.lane.b32.xlu0 %v674_v16, %s1795_s20 }
  0x6b   : > { %690 = vrot.lane.b32.xlu1 %v2044_v17, %s1794_s27  ;;  %701 = vrot.lane.b32.xlu2 %v700_v20, %s1795_s20 }
  0x6d   : > { %686 = vrot.lane.b32.xlu0 %v683_v21, %s1796_s26 }
  0x73   : > { %710 = vrot.lane.b32.xlu1 %v682_v18, %s1796_s26  ;;  %712 = vrot.lane.b32.xlu2 %v709_v24, %s1796_s26 }
  0x75   : > { %703 = vrot.lane.b32.xlu0 %v699_v19, %s1795_s20 }
  0x7b   : > { %716 = vrot.lane.b32.xlu1 %v2055_v22, %s1794_s27  ;;  %733 = vrot.lane.b32.xlu2 %v708_v23, %s1796_s26 }
  0x7d   : > { %727 = vrot.lane.b32.xlu0 %v726_v26, %s1795_s20 }
  0x83   : > { %737 = vrot.lane.b32.xlu1 %v601_v27, %s1794_s27  ;;  %s1800_s27 = smov 96  }
  0x85   : > { %729 = vrot.lane.b32.xlu0 %v725_v25, %s1795_s20  ;;  %s1801_s20 = smov 64  }
  0x9d   : > { %v638_v30 = vpop.permute.xlu2 %637 }
  0xa5   : > { %v605_v31 = vpop.permute.xlu2 %604 }
  0xa6   : > { %v619_v46 = vsel %vm618_vm3, %v2017_v5, %v605_v31 }
  0xad   : > { %v652_v35 = vpop.permute.xlu2 %651 }
  0xae   : > { %v668_v53 = vsel %vm618_vm3, %v2006_v1, %v652_v35 }
  0xb5   : > { %v616_v32 = vpop.permute.xlu1 %615  ;;  %v665_v49 = vpop.permute.xlu2 %664 }
  0xb7   : > { %v626_v33 = vpop.permute.xlu0 %625 }
  0xb8   : > { %v640_v36 = vsel %vm618_vm3, %v2017_v5, %v626_v33  ;;  %v641_v38 = vsel %vm618_vm3, %v2003_v0, %v626_v33 }
  0xbd   : > { %v634_v34 = vpop.permute.xlu1 %633  ;;  %v685_v60 = vpop.permute.xlu2 %684 }
  0xbe   : > { %v643_v40 = vsel %vm620_vm4, %v641_v38, %v634_v34 }
  0xbf   : > { %v632_v37 = vpop.permute.xlu0 %631  ;;  %v645_v42 = vsel %vm622_vm5, %v643_v40, %v638_v30 }
  0xc0   : > { %v642_v39 = vsel %vm620_vm4, %v640_v36, %v632_v37  ;;  %v749_v45 = vrot.slane %v645_v42, 1 }
  0xc1   : > { %v644_v41 = vsel %vm622_vm5, %v642_v39, %v616_v32 }
  0xc2   : > { %v748_v43 = vrot.slane %v644_v41, 1 }
  0xc4   : > { %v750_v51 = vsel %vm646_vm1, %v748_v43, %v749_v45 }
  0xc5   : > { %v650_v44 = vpop.permute.xlu1 %649  ;;  %v702_v6 = vpop.permute.xlu2 %701 }
  0xc6   : > { %v667_v56 = vsel %vm618_vm3, %v2003_v0, %v650_v44  ;;  %v719_v24 = vsel %vm618_vm3, %v2028_v11, %v702_v6 }
  0xc7   : > { %v613_v47 = vpop.permute.xlu0 %612 }
  0xc8   : > { %v621_v48 = vsel %vm620_vm4, %v619_v46, %v613_v47  ;;  %v1576_v46 = vld [vmem:[#allocation5] ss:$0 sm:$0xff] }
  0xc9   : > { %v623_v50 = vsel %vm622_vm5, %v621_v48, %v616_v32 }
  0xca   : > { %v782_v52 = vsel %vm755_vm6, %v623_v50, %v750_v51 }
  0xcb   : > { %1478 = vmatmul.msk.f32.vlgmr.msra.gmra.mxu0 %vm793_vm7, %v782_v52 }
  0xcd   : > { %v661_v54 = vpop.permute.xlu1 %660 }
  0xce   : > { %v670_v55 = vsel %vm620_vm4, %v668_v53, %v661_v54 }
  0xcf   : > { %v672_v57 = vsel %vm622_vm5, %v670_v55, %v665_v49  ;;  %v659_v58 = vpop.permute.xlu0 %658 }
  0xd0   : > { %v669_v59 = vsel %vm620_vm4, %v667_v56, %v659_v58  ;;  %v757_v62 = vrot.slane %v672_v57, 2 }
  0xd1   : > { %v671_v61 = vsel %vm622_vm5, %v669_v59, %v638_v30 }
  0xd2   : > { %v756_v63 = vrot.slane %v671_v61, 2 }
  0xd4   : > { %v758_v2 = vsel %vm755_vm6, %v756_v63, %v757_v62 }
  0xd5   : > { %v678_v3 = vpop.permute.xlu1 %677  ;;  %v783_v4 = vsel %vm770_vm2, %v749_v45, %v758_v2 }
  0xd6   : > { %1479 = vmatmul.msk.f32.gmra.mxu0 %vm793_vm7, %v783_v4  ;;  %v694_v9 = vsel %vm618_vm3, %v2028_v11, %v678_v3 }
  0xd7   : > { %v676_v5 = vpop.permute.xlu0 %675 }
  0xd8   : > { %v693_v0 = vsel %vm618_vm3, %v2006_v1, %v676_v5  ;;  %v713_v1 = vpop.permute.xlu2 %712 }
  0xd9   : > { %v695_v7 = vsel %vm620_vm4, %v693_v0, %v685_v60 }
  0xda   : > { %v697_v10 = vsel %vm622_vm5, %v695_v7, %v665_v49 }
  0xdb   : > { %v764_v15 = vrot.slane %v697_v10, 3 }
  0xdd   : > { %v691_v8 = vpop.permute.xlu1 %690 }
  0xdf   : > { %v687_v12 = vpop.permute.xlu0 %686 }
  0xe0   : > { %v696_v13 = vsel %vm620_vm4, %v694_v9, %v687_v12  ;;  %v734_v29 = vpop.permute.xlu2 %733 }
  0xe1   : > { %v698_v14 = vsel %vm622_vm5, %v696_v13, %v691_v8 }
  0xe2   : > { %v765_v16 = vrot.slane %v698_v14, 3 }
  0xe4   : > { %v766_v18 = vsel %vm763_vm8, %v764_v15, %v765_v16  ;;  %vm1299_vm8 = vcmask 49152  }
  0xe5   : > { %v711_v19 = vpop.permute.xlu1 %710  ;;  %v785_v20 = vsel %vm784_vm9, %v757_v62, %v766_v18 }
  0xe6   : > { %1480 = vmatmul.msk.f32.gmra.mxu0 %vm793_vm7, %v785_v20  ;;  %v721_v25 = vsel %vm620_vm4, %v719_v24, %v711_v19 }
  0xe7   : > { %v704_v21 = vpop.permute.xlu0 %703  ;;  %v723_v30 = vsel %vm622_vm5, %v721_v25, %v691_v8 }
  0xe8   : > { %v720_v23 = vsel %vm618_vm3, %v2044_v17, %v704_v21  ;;  %v771_v35 = vrot.slane %v723_v30, 4  ;;  %v961_v30 = vld [vmem:[%s2458_s4 + $0x20] sm:$0xff] }
  0xe9   : > { %v722_v26 = vsel %vm620_vm4, %v720_v23, %v713_v1 }
  0xed   : > { %v717_v27 = vpop.permute.xlu1 %716 }
  0xee   : > { %v724_v28 = vsel %vm622_vm5, %v722_v26, %v717_v27 }
  0xef   : > { %v728_v31 = vpop.permute.xlu0 %727  ;;  %v772_v32 = vrot.slane %v724_v28, 4  ;;  %v963_v28 = vld [vmem:[%s2458_s4 + $0x30] sm:$0xff] }
  0xf0   : > { %v740_v33 = vsel %vm618_vm3, %v2044_v17, %v728_v31  ;;  %v960_v31 = vld [vmem:[%s2458_s4 + $0x18] sm:$0xff] }
  0xf1   : > { %v742_v34 = vsel %vm620_vm4, %v740_v33, %v734_v29  ;;  %v773_v37 = vsel %vm770_vm2, %v771_v35, %v772_v32  ;;  %v959_v32 = vld [vmem:[%s2458_s4 + $0x10] sm:$0xff]  ;;  %v958_v33 = vld [vmem:[%s2458_s4 + $0x8] sm:$0xff] }
  0xf2   : > { %v744_v11 = vsel %vm622_vm5, %v742_v34, %v717_v27  ;;  %v964_v27 = vld [vmem:[%s2458_s4 + $0x38] sm:$0xff]  ;;  %v957_v34 = vld [vmem:[%s2458_s4] sm:$0xff] }
  0xf3   : > { %v778_v36 = vrot.slane %v744_v11, 5  ;;  %981 = vmatpush.msra.mxu1 %v964_v27  ;;  %v1065_v27 = vld [vmem:[%s2462_s8 + $0x78] sm:$0xff] }
  0xf4   : > { %1156 = vmatpush.msrb.mxu0 %v1065_v27 }
  0xf5   : > { %v786_v38 = vsel %vm755_vm6, %v773_v37, %v778_v36  ;;  %v738_v40 = vpop.permute.xlu1 %737  ;;  %982 = vmatpush.msra.mxu1 %v963_v28  ;;  %v1079_v28 = vld [vmem:[%s2463_s9 + $0x68] sm:$0xff] }
  0xf6   : > { %1481 = vmatmul.msk.f32.gmra.mxu0 %vm793_vm7, %v786_v38 }
  0xf7   : > { %v730_v39 = vpop.permute.xlu0 %729 }
  0xf8   : > { %v741_v41 = vsel %vm618_vm3, %v2055_v22, %v730_v39 }
  0xf9   : > { %v743_v42 = vsel %vm620_vm4, %v741_v41, %v734_v29  ;;  %v962_v29 = vld [vmem:[%s2458_s4 + $0x28] sm:$0xff] }
  0xfa   : > { %v745_v17 = vsel %vm622_vm5, %v743_v42, %v738_v40  ;;  %983 = vmatpush.msra.mxu1 %v962_v29  ;;  %v1074_v29 = vld [vmem:[%s2463_s9 + $0x40] sm:$0xff] }
  0xfb   : > { %v779_v43 = vrot.slane %v745_v17, 5 }
  0xfc   : > { %984 = vmatpush.msra.mxu1 %v961_v30  ;;  %v1063_v30 = vld [vmem:[%s2462_s8 + $0x68] sm:$0xff] }
  0xfd   : > { %v780_v44 = vsel %vm777_vm10, %v778_v36, %v779_v43  ;;  %1157 = vmatpush.msrb.mxu0 %v1063_v30 }
  0xfe   : > { %1482 = vmatmul.msk.f32.gmra.mxu0 %vm793_vm7, %v780_v44  ;;  %985 = vmatpush.msra.mxu1 %v960_v31  ;;  %v1077_v31 = vld [vmem:[%s2463_s9 + $0x58] sm:$0xff] }
 0x100   : > { %986 = vmatpush.msra.mxu1 %v959_v32  ;;  %v1061_v32 = vld [vmem:[%s2462_s8 + $0x58] sm:$0xff] }
 0x101   : > { %1158 = vmatpush.msrb.mxu0 %v1061_v32  ;;  %v1236_v32 = vld [vmem:[%s2465_s11 + $0x30] sm:$0xff] }
 0x102   : > { %987 = vmatpush.msra.mxu1 %v958_v33  ;;  %v1072_v33 = vld [vmem:[%s2463_s9 + $0x30] sm:$0xff] }
 0x104   : > { %988 = vmatpush.msra.mxu1 %v957_v34  ;;  %v1075_v34 = vld [vmem:[%s2463_s9 + $0x48] sm:$0xff] }
 0x148   : > { %v828_v45 = vpop.f32.mrf.mxu0 }
 0x149   : > { %v829_v47 = vadd.f32 %v1576_v46, %v828_v45 }
 0x14b   : > { %v843_v49 = vmax.f32 %v829_v47, 0.0 }
 0x14d   : > { %v849_v52 = vrot.slane %v843_v49, 1 }
 0x14f   : > { %v2137_v54 = vmax.f32 %v843_v49, %v849_v52 }
 0x151   : > { %v853_v39 = vrot.slane %v2137_v54, 6 }
 0x153   : > { %v831_v48 = vpop.f32.mrf.mxu0  ;;  %v855_v44 = vmax.f32 %v2137_v54, %v853_v39  ;;  %v1066_v39 = vld [vmem:[%s2463_s9] sm:$0xff] }
 0x154   : > { %v832_v50 = vadd.f32 %v1576_v46, %v831_v48 }
 0x156   : > { %v844_v51 = vmax.f32 %v832_v50, 0.0 }
 0x158   : > { %v857_v53 = vrot.slane %v844_v51, 1 }
 0x15a   : > { %v859_v22 = vmax.f32 %v844_v51, %v857_v53 }
 0x15c   : > { %v861_v55 = vrot.slane %v859_v22, 6 }
 0x15e   : > { %v2140_v56 = vmax.f32 %v2137_v54, %v861_v55 }
 0x160   : > { %v890_v57 = vrot.slane %v2140_v56, 2 }
 0x162   : > { %891 = vrot.lane.b32.xlu2 %v890_v57, %s1797_s15 }
 0x163   : > { %v834_v58 = vpop.f32.mrf.mxu0 }
 0x164   : > { %v835_v59 = vadd.f32 %v1576_v46, %v834_v58 }
 0x166   : > { %v845_v60 = vmax.f32 %v835_v59, 0.0 }
 0x168   : > { %v865_v61 = vrot.slane %v845_v60, 1 }
 0x16a   : > { %v867_v62 = vmax.f32 %v845_v60, %v865_v61  ;;  %v1026_v61 = vld [vmem:[%s2460_s6 + $0x78] sm:$0xff] }
 0x16b   : > { %1028 = vmatpush.msra.mxu2 %v1026_v61 }
 0x16c   : > { %v869_v63 = vrot.slane %v867_v62, 6 }
 0x16e   : > { %v2143_v2 = vmax.f32 %v859_v22, %v869_v63  ;;  %v872_v3 = vmax.f32 %v867_v62, %v869_v63  ;;  %v1025_v62 = vld [vmem:[%s2460_s6 + $0x70] sm:$0xff]  ;;  %v1024_v63 = vld [vmem:[%s2460_s6 + $0x68] sm:$0xff] }
 0x16f   : > { %1029 = vmatpush.msra.mxu2 %v1025_v62 }
 0x170   : > { %v910_v4 = vrot.slane %v872_v3, 6  ;;  %v917_v5 = vrot.slane %v2143_v2, 2  ;;  %v895_v0 = vrot.slane %v2143_v2, 4  ;;  %v934_v10 = vrot.slane %v872_v3, 2 }
 0x171   : > { %v899_v19 = vrot.slane %v2143_v2, 6  ;;  %1030 = vmatpush.msra.mxu2 %v1024_v63 }
 0x172   : > { %911 = vrot.lane.b32.xlu2 %v910_v4, %s1798_s21  ;;  %918 = vrot.lane.b32.xlu1 %v917_v5, %s1797_s15 }
 0x173   : > { %896 = vrot.lane.b32.xlu0 %v895_v0, %s1799_s23  ;;  %v837_v6 = vpop.f32.mrf.mxu0 }
 0x174   : > { %v838_v7 = vadd.f32 %v1576_v46, %v837_v6 }
 0x176   : > { %v846_v8 = vmax.f32 %v838_v7, 0.0 }
 0x178   : > { %v874_v9 = vrot.slane %v846_v8, 1 }
 0x17a   : > { %v876_v12 = vmax.f32 %v846_v8, %v874_v9  ;;  %935 = vrot.lane.b32.xlu1 %v934_v10, %s1797_s15  ;;  %v1023_v8 = vld [vmem:[%s2460_s6 + $0x60] sm:$0xff]  ;;  %v1022_v9 = vld [vmem:[%s2460_s6 + $0x58] sm:$0xff]  ;;  %v1021_v10 = vld [vmem:[%s2460_s6 + $0x50] sm:$0xff] }
 0x17b   : > { %v840_v13 = vpop.f32.mrf.mxu0  ;;  %1031 = vmatpush.msra.mxu2 %v1023_v8 }
 0x17c   : > { %v841_v14 = vadd.f32 %v1576_v46, %v840_v13  ;;  %v878_v15 = vrot.slane %v876_v12, 6  ;;  %v1019_v13 = vld [vmem:[%s2460_s6 + $0x40] sm:$0xff] }
 0x17d   : > { %1032 = vmatpush.msra.mxu2 %v1022_v9 }
 0x17e   : > { %v847_v16 = vmax.f32 %v841_v14, 0.0  ;;  %v880_v18 = vmax.f32 %v876_v12, %v878_v15  ;;  %v1018_v14 = vld [vmem:[%s2460_s6 + $0x38] sm:$0xff]  ;;  %v1017_v15 = vld [vmem:[%s2460_s6 + $0x30] sm:$0xff] }
 0x17f   : > { %1033 = vmatpush.msra.mxu2 %v1021_v10 }
 0x180   : > { %v882_v1 = vrot.slane %v847_v16, 1  ;;  %v922_v20 = vrot.slane %v880_v18, 4  ;;  %v1015_v18 = vld [vmem:[%s2460_s6 + $0x20] sm:$0xff] }
 0x182   : > { %v884_v21 = vmax.f32 %v847_v16, %v882_v1  ;;  %900 = vrot.lane.b32.xlu1 %v899_v19, %s1798_s21  ;;  %923 = vrot.lane.b32.xlu0 %v922_v20, %s1799_s23  ;;  %v1016_v16 = vld [vmem:[%s2460_s6 + $0x28] sm:$0xff]  ;;  %v1014_v1 = vld [vmem:[%s2460_s6 + $0x18] sm:$0xff] }
 0x183   : > { %v1013_v19 = vld [vmem:[%s2460_s6 + $0x10] sm:$0xff]  ;;  %v1012_v20 = vld [vmem:[%s2460_s6 + $0x8] sm:$0xff] }
 0x184   : > { %v886_v23 = vrot.slane %v884_v21, 6  ;;  %v1011_v21 = vld [vmem:[%s2460_s6] sm:$0xff] }
 0x186   : > { %v888_v24 = vmax.f32 %v876_v12, %v886_v23  ;;  %v1020_v12 = vld [vmem:[%s2460_s6 + $0x48] sm:$0xff]  ;;  %v1080_v23 = vld [vmem:[%s2463_s9 + $0x70] sm:$0xff] }
 0x187   : > { %1034 = vmatpush.msra.mxu2 %v1020_v12  ;;  %1093 = vmatpush.msra.mxu3 %v1080_v23 }
 0x188   : > { %v938_v25 = vrot.slane %v888_v24, 4  ;;  %v927_v26 = vrot.slane %v888_v24, 6  ;;  %v1078_v24 = vld [vmem:[%s2463_s9 + $0x60] sm:$0xff] }
 0x189   : > { %1035 = vmatpush.msra.mxu2 %v1019_v13  ;;  %1094 = vmatpush.msra.mxu3 %v1078_v24 }
 0x18a   : > { %939 = vrot.lane.b32.xlu0 %v938_v25, %s1799_s23  ;;  %928 = vrot.lane.b32.xlu2 %v927_v26, %s1798_s21  ;;  %v1076_v25 = vld [vmem:[%s2463_s9 + $0x50] sm:$0xff]  ;;  %v1081_v26 = vld [vmem:[%s2463_s9 + $0x78] sm:$0xff] }
 0x18b   : > { %1036 = vmatpush.msra.mxu2 %v1018_v14  ;;  %1113 = vmatpush.msrb.mxu1 %v1081_v26 }
 0x18c   : > { %1095 = vmatpush.msra.mxu3 %v1076_v25 }
 0x18d   : > { %1037 = vmatpush.msra.mxu2 %v1017_v15  ;;  %1114 = vmatpush.msrb.mxu1 %v1079_v28 }
 0x18e   : > { %1096 = vmatpush.msra.mxu3 %v1074_v29 }
 0x18f   : > { %1038 = vmatpush.msra.mxu2 %v1016_v16  ;;  %1115 = vmatpush.msrb.mxu1 %v1077_v31  ;;  %v1237_v31 = vld [vmem:[%s2465_s11 + $0x38] sm:$0xff] }
 0x190   : > { %1097 = vmatpush.msra.mxu3 %v1072_v33  ;;  %v1235_v33 = vld [vmem:[%s2465_s11 + $0x28] sm:$0xff] }
 0x191   : > { %1039 = vmatpush.msra.mxu2 %v1015_v18  ;;  %1116 = vmatpush.msrb.mxu1 %v1075_v34  ;;  %v1234_v34 = vld [vmem:[%s2465_s11 + $0x20] sm:$0xff] }
 0x193   : > { %1040 = vmatpush.msra.mxu2 %v1014_v1 }
 0x195   : > { %1041 = vmatpush.msra.mxu2 %v1013_v19 }
 0x197   : > { %1042 = vmatpush.msra.mxu2 %v1012_v20 }
 0x199   : > { %1043 = vmatpush.msra.mxu2 %v1011_v21 }
 0x1bc   : > { %v892_v11 = vpop.permute.xlu2 %891 }
 0x1bd   : > { %v914_v42 = vsel %vm903_vm11, %v2140_v56, %v892_v11  ;;  %v904_v48 = vsel %vm903_vm11, %v855_v44, %v892_v11  ;;  %v1070_v11 = vld [vmem:[%s2463_s9 + $0x20] sm:$0xff]  ;;  %v1056_v44 = vld [vmem:[%s2462_s8 + $0x30] sm:$0xff] }
 0x1be   : > { %1098 = vmatpush.msra.mxu3 %v1070_v11 }
 0x1cc   : > { %v912_v38 = vpop.permute.xlu2 %911 }
 0x1e4   : > { %v919_v35 = vpop.permute.xlu1 %918  ;;  %v929_v45 = vpop.permute.xlu2 %928 }
 0x1e5   : > { %v897_v36 = vpop.permute.xlu0 %896  ;;  %v931_v41 = vsel %vm903_vm11, %v2143_v2, %v919_v35  ;;  %v1059_v35 = vld [vmem:[%s2462_s8 + $0x48] sm:$0xff] }
 0x1e6   : > { %v915_v43 = vsel %vm905_vm12, %v914_v42, %v897_v36  ;;  %v906_v50 = vsel %vm905_vm12, %v904_v48, %v897_v36  ;;  %v1073_v36 = vld [vmem:[%s2463_s9 + $0x38] sm:$0xff]  ;;  %1159 = vmatpush.msrb.mxu0 %v1059_v35  ;;  %v1062_v42 = vld [vmem:[%s2462_s8 + $0x60] sm:$0xff] }
 0x1e7   : > { %v916_v49 = vsel %vm907_vm13, %v915_v43, %v912_v38  ;;  %v1068_v38 = vld [vmem:[%s2463_s9 + $0x10] sm:$0xff]  ;;  %1117 = vmatpush.msrb.mxu1 %v1073_v36  ;;  %v1058_v43 = vld [vmem:[%s2462_s8 + $0x40] sm:$0xff]  ;;  %v1233_v35 = vld [vmem:[%s2465_s11 + $0x18] sm:$0xff] }
 0x1e8   : > { %v946_v55 = vrot.slane %v916_v49, 1  ;;  %1099 = vmatpush.msra.mxu3 %v1068_v38  ;;  %v1232_v36 = vld [vmem:[%s2465_s11 + $0x10] sm:$0xff]  ;;  %v1231_v38 = vld [vmem:[%s2465_s11 + $0x8] sm:$0xff] }
 0x1ea   : > { %1100 = vmatpush.msra.mxu3 %v1066_v39  ;;  %v1230_v39 = vld [vmem:[%s2465_s11] sm:$0xff] }
 0x1ec   : > { %v936_v37 = vpop.permute.xlu1 %935 }
 0x1ed   : > { %v942_v51 = vsel %vm903_vm11, %v2143_v2, %v936_v37  ;;  %v1577_v2 = vld [vmem:[%s2459_s5] ss:$0 sm:$0xff]  ;;  %v1057_v37 = vld [vmem:[%s2462_s8 + $0x38] sm:$0xff] }
 0x1ee   : > { %1160 = vmatpush.msrb.mxu0 %v1057_v37 }
 0x1f4   : > { %v924_v40 = vpop.permute.xlu0 %923  ;;  %v901_v46 = vpop.permute.xlu1 %900 }
 0x1f5   : > { %v932_v17 = vsel %vm905_vm12, %v931_v41, %v924_v40  ;;  %v908_v52 = vsel %vm907_vm13, %v906_v50, %v901_v46  ;;  %v1064_v40 = vld [vmem:[%s2462_s8 + $0x70] sm:$0xff]  ;;  %v2309_v41 = vld [vmem:[%s523_s3] sm:$0x1]  ;;  %s1347_s3 = sshll.u32 %s1343_s29, 4  ;;  %s1348_s3 = int_to_ptr.hbm [resolvable:$true] %s1347_s3 }
 0x1f6   : > { %v933_v47 = vsel %vm907_vm13, %v932_v17, %v929_v45  ;;  %v954_v54 = vsel %vm608_vm0, %v908_v52, %v946_v55  ;;  %1136 = vmatpush.msrb.mxu3 %v1064_v40  ;;  %v1060_v17 = vld [vmem:[%s2462_s8 + $0x50] sm:$0xff]  ;;  %v1054_v52 = vld [vmem:[%s2462_s8 + $0x20] sm:$0xff]  ;;  %s1700_s15 = sshra.s32 %s1348_s3, 4  ;;  %s1701_s15 = int_to_ptr.hbm [resolvable:$true] %s1700_s15 }
 0x1f7   : > { %v949_v53 = vrot.slane %v933_v47, 2  ;;  %1484 = vmatmul.msk.f32.vlgmr.msra.gmra.mxu3 %vm969_vm14, %v2309_v41  ;;  %v1052_v55 = vld [vmem:[%s2462_s8 + $0x10] sm:$0xff]  ;;  %s1702_s21 = scalar_lea.hbm %s1701_s15, 1  ;;  %p1707_p10 = scmp.lt.s32.totalorder %s1701_s15, %s2470_s16 }
 0x1f8   : > { %1137 = vmatpush.msrb.mxu3 %v1062_v42  ;;  %p1703_p1 = scmp.ne.s32.totalorder %s1701_s15, %s1702_s21  ;;  %p1708_p2 = scmp.lt.s32.totalorder %s1706_s18, %s1702_s21 }
 0x1f9   : > { %v955_v59 = vsel %vm784_vm9, %v954_v54, %v949_v53  ;;  %v1055_v53 = vld [vmem:[%s2462_s8 + $0x28] sm:$0xff]  ;;  %v1050_v54 = vld [vmem:[%s2462_s8] sm:$0xff] }
 0x1fa   : > { %1138 = vmatpush.msrb.mxu3 %v1060_v17  ;;  %1161 = vmatpush.msrb.mxu0 %v1055_v53  ;;  %v1277_v53 = vld [vmem:[#allocation7 + $0x78] sm:$0xff]  ;;  %p1704_p4 = pnand %p1703_p1, %p1956_p5  ;;  %p1709_p11 = por %p1708_p2, %p1707_p10 }
 0x1fb   : > { %1279 = vmatpush.msrb.mxu2 %v1277_v53 }
 0x1fc   : > { %v940_v22 = vpop.permute.xlu0 %939  ;;  %1139 = vmatpush.msrb.mxu3 %v1058_v43  ;;  %p1705_p9 = pneg %p1704_p4 }
 0x1fd   : > { %v943_v56 = vsel %vm905_vm12, %v942_v51, %v940_v22  ;;  %v1071_v51 = vld [vmem:[%s2463_s9 + $0x28] sm:$0xff]  ;;  %v1069_v22 = vld [vmem:[%s2463_s9 + $0x18] sm:$0xff] }
 0x1fe   : > { %v944_v57 = vsel %vm907_vm13, %v943_v56, %v929_v45  ;;  %1140 = vmatpush.msrb.mxu3 %v1056_v44  ;;  %1118 = vmatpush.msrb.mxu1 %v1071_v51  ;;  %v1053_v56 = vld [vmem:[%s2462_s8 + $0x18] sm:$0xff]  ;;  %p1710_p12 = pnand %p1709_p11, %p1705_p9 }
 0x1ff   : > { %v952_v58 = vrot.slane %v944_v57, 3  ;;  %v1067_v57 = vld [vmem:[%s2463_s9 + $0x8] sm:$0xff]  ;;  %1162 = vmatpush.msrb.mxu0 %v1053_v56  ;;  %v1273_v56 = vld [vmem:[#allocation7 + $0x58] sm:$0xff] }
 0x200   : > { %1141 = vmatpush.msrb.mxu3 %v1054_v52  ;;  %1119 = vmatpush.msrb.mxu1 %v1069_v22  ;;  %v1276_v22 = vld [vmem:[#allocation7 + $0x70] sm:$0xff] }
 0x201   : > { %v956_v60 = vsel %vm777_vm10, %v955_v59, %v952_v58  ;;  %v1051_v58 = vld [vmem:[%s2462_s8 + $0x8] sm:$0xff]  ;;  %v1027_v59 = vld [vmem:[%s2461_s7] sm:$0x1]  ;;  %1280 = vmatpush.msrb.mxu2 %v1276_v22 }
 0x202   : > { %1483 = vmatmul.msk.f32.vlgmr.msra.gmra.mxu1 %vm969_vm14, %v956_v60  ;;  %1142 = vmatpush.msrb.mxu3 %v1052_v55  ;;  %v1274_v55 = vld [vmem:[#allocation7 + $0x60] sm:$0xff] }
 0x203   : > { %1120 = vmatpush.msrb.mxu1 %v1067_v57  ;;  %1163 = vmatpush.msrb.mxu0 %v1051_v58  ;;  %v1272_v57 = vld [vmem:[#allocation7 + $0x50] sm:$0xff]  ;;  %v1270_v58 = vld [vmem:[#allocation7 + $0x40] sm:$0xff] }
 0x204   : > { %1143 = vmatpush.msrb.mxu3 %v1050_v54  ;;  %v1271_v54 = vld [vmem:[#allocation7 + $0x48] sm:$0xff] }
 0x205   : > { %1249 = vmatpush.msra.mxu1 %v1237_v31 }
 0x207   : > { %1250 = vmatpush.msra.mxu1 %v1236_v32 }
 0x209   : > { %1251 = vmatpush.msra.mxu1 %v1235_v33 }
 0x20a   : > { %1485 = vmatmul.msk.f32.vlgmr.msrb.gmra.mxu1 %vm969_vm14, %v2309_v41 }
 0x20b   : > { %1252 = vmatpush.msra.mxu1 %v1234_v34 }
 0x20d   : > { %1253 = vmatpush.msra.mxu1 %v1233_v35 }
 0x20f   : > { %1254 = vmatpush.msra.mxu1 %v1232_v36 }
 0x211   : > { %1255 = vmatpush.msra.mxu1 %v1231_v38 }
 0x213   : > { %1256 = vmatpush.msra.mxu1 %v1230_v39 }
 0x27a   : > { %v1102_v63 = vpop.f32.mrf.mxu3 }
 0x27f   : > { %v990_v3 = vpop.f32.mrf.mxu1 }
 0x280   : > { %v991_v4 = vadd.f32 %v1577_v2, %v990_v3  ;;  %v1168_v2 = vld [vmem:[%s2464_s10] sm:$0x3] }
 0x281   : > { %v1170_v3 = vperm.slane %v1168_v2, 0  ;;  %v1171_v13 = vperm.slane %v1168_v2, 1  ;;  %v1266_v2 = vld [vmem:[#allocation7 + $0x20] sm:$0xff] }
 0x282   : > { %v2204_v5 = vmax.f32 %v991_v4, 0.0 }
 0x284   : > { %v1003_v0 = vrot.slane %v2204_v5, 3  ;;  %v999_v6 = vrot.slane %v2204_v5, 2  ;;  %v995_v7 = vrot.slane %v2204_v5, 1 }
 0x286   : > { %1004 = vrot.lane.b32.xlu1 %v1003_v0, %s1800_s27  ;;  %1000 = vrot.lane.b32.xlu0 %v999_v6, %s1801_s20 }
 0x287   : > { %996 = vrot.lane.b32.xlu2 %v995_v7, %s1799_s23  ;;  %v1122_v9 = vpop.f32.mrf.mxu1 }
 0x2e1   : > { %v997_v45 = vpop.permute.xlu2 %996 }
 0x2e2   : > { %v1007_v46 = vsel %vm905_vm12, %v2204_v5, %v997_v45 }
 0x2f8   : > { %v1005_v47 = vpop.permute.xlu1 %1004  ;;  %v1001_v48 = vpop.permute.xlu0 %1000 }
 0x2f9   : > { %v1008_v49 = vsel %vm969_vm14, %v1007_v46, %v1001_v48 }
 0x2fa   : > { %v1010_v50 = vsel %vm1009_vm15, %v1008_v49, %v1005_v47 }
 0x2fb   : > { %1044 = vmatmul.f32.vlgmr.msra.gmra.mxu2 %v1010_v50 }
 0x37e   : > { %v1045_v60 = vpop.f32.mrf.mxu2 }
 0x37f   : > { %v1046_v61 = vadd.f32 %v1045_v60, %v1027_v59  ;;  %v1269_v59 = vld [vmem:[#allocation7 + $0x38] sm:$0xff]  ;;  %v1268_v60 = vld [vmem:[#allocation7 + $0x30] sm:$0xff] }
 0x381   : > { %v1048_v62 = vmax.f32 %v1046_v61, 0.0  ;;  %v1267_v61 = vld [vmem:[#allocation7 + $0x28] sm:$0xff] }
 0x383   : > { %1486 = vmatmul.msk.f32.vlgmr.msrb.gmra.mxu3 %vm969_vm14, %v1048_v62  ;;  %1487 = vmatmul.msk.f32.vlgmr.msrb.gmra.mxu0 %vm969_vm14, %v1048_v62 }
 0x400   : > { %v1165_v10 = vpop.f32.mrf.mxu0 }
 0x401   : > { %v1166_v12 = vadd.f32 %v1165_v10, %v1122_v9  ;;  %v1278_v10 = vld [vmem:[%s2468_s14] sm:$0x1] }
 0x403   : > { %v1175_v15 = vadd.f32 %v1171_v13, %v1166_v12 }
 0x405   : > { %v1489_v28 = vmul.f32 -1.442695, %v1175_v15 }
 0x406   : > { %v1145_v4 = vpop.f32.mrf.mxu3 }
 0x407   : > { %v1146_v5 = vadd.f32 %v1145_v4, %v1102_v63  ;;  %v1264_v4 = vld [vmem:[#allocation7 + $0x10] sm:$0xff] }
 0x409   : > { %v1174_v0 = vadd.f32 %v1170_v3, %v1146_v5  ;;  %v1265_v3 = vld [vmem:[#allocation7 + $0x18] sm:$0xff]  ;;  %v1263_v5 = vld [vmem:[#allocation7 + $0x8] sm:$0xff] }
 0x40b   : > { %v1488_v6 = vmul.f32 -1.442695, %v1174_v0  ;;  %v1262_v0 = vld [vmem:[#allocation7] sm:$0xff] }
 0x40d   : > { %1578 = vpow2.f32 %v1488_v6  ;;  %v1238_v6 = vld [vmem:[%s2466_s12] sm:$0x1] }
 0x413   : > { %v1579_v7 = vpop.eup %1578 }
 0x414   : > { %v1179_v8 = vadd.f32 1.0, %v1579_v7 }
 0x416   : > { %1580 = vrcp.f32 %v1179_v8  ;;  %v1191_v1 = vand.u32 2147483648, %v1179_v8  ;;  %v1189_v20 = vand.u32 2147483647, %v1179_v8  ;;  %vm1185_vm1 = vweird.f32 %v1179_v8 }
 0x417   : > { %1582 = vtanh.f32 %v1175_v15 }
 0x418   : > { %v1192_v23 = vor.u32 1.1754944e-38, %v1191_v1  ;;  %vm1190_vm3 = vcmp.eq.f32.partialorder %v1189_v20, 8.507059e+37  ;;  %1584 = vpow2.f32 %v1489_v28 }
 0x41c   : > { %v1581_v14 = vpop.eup %1580 }
 0x41d   : > { %v1181_v16 = vmul.f32 %v1581_v14, %v1179_v8  ;;  %vm1186_vm0 = vweird.f32 %v1581_v14  ;;  %v1583_v25 = vpop.eup %1582 }
 0x41e   : > { %vm1187_vm2 = vmor %vm1185_vm1, %vm1186_vm0  ;;  %v1585_v29 = vpop.eup %1584 }
 0x41f   : > { %v1182_v18 = vsub.f32 1.0, %v1181_v16  ;;  %v1199_v30 = vadd.f32 1.0, %v1585_v29 }
 0x421   : > { %v1183_v19 = vmul.f32 %v1581_v14, %v1182_v18  ;;  %1586 = vrcp.f32 %v1199_v30  ;;  %v1211_v46 = vand.u32 2147483648, %v1199_v30  ;;  %vm1205_vm5 = vweird.f32 %v1199_v30 }
 0x422   : > { %v1209_v47 = vand.u32 2147483647, %v1199_v30 }
 0x423   : > { %v1184_v21 = vadd.f32 %v1581_v14, %v1183_v19  ;;  %v1212_v49 = vor.u32 1.1754944e-38, %v1211_v46 }
 0x424   : > { %vm1210_vm7 = vcmp.eq.f32.partialorder %v1209_v47, 8.507059e+37 }
 0x425   : > { %v1188_v24 = vsel %vm1187_vm2, %v1581_v14, %v1184_v21 }
 0x426   : > { %v1193_v26 = vsel %vm1190_vm3, %v1192_v23, %v1188_v24 }
 0x427   : > { %v1216_v27 = vmul.f32 %v1583_v25, %v1193_v26  ;;  %v1587_v11 = vpop.eup %1586  ;;  %v1215_v17 = vmul.f32 %v1193_v26, %v2309_v41  ;;  %v1275_v41 = vld [vmem:[#allocation7 + $0x68] sm:$0xff] }
 0x428   : > { %v1201_v37 = vmul.f32 %v1587_v11, %v1199_v30  ;;  %vm1206_vm4 = vweird.f32 %v1587_v11  ;;  %1281 = vmatpush.msrb.mxu2 %v1275_v41 }
 0x429   : > { %1218 = vrot.lane.b32.xlu2 %v1216_v27, %s1801_s20  ;;  %vm1207_vm6 = vmor %vm1205_vm5, %vm1206_vm4 }
 0x42a   : > { %v1202_v40 = vsub.f32 1.0, %v1201_v37  ;;  %1282 = vmatpush.msrb.mxu2 %v1274_v55 }
 0x42c   : > { %v1203_v42 = vmul.f32 %v1587_v11, %v1202_v40  ;;  %1283 = vmatpush.msrb.mxu2 %v1273_v56 }
 0x42e   : > { %v1204_v45 = vadd.f32 %v1587_v11, %v1203_v42  ;;  %1284 = vmatpush.msrb.mxu2 %v1272_v57 }
 0x430   : > { %v1208_v48 = vsel %vm1207_vm6, %v1587_v11, %v1204_v45  ;;  %1285 = vmatpush.msrb.mxu2 %v1271_v54 }
 0x431   : > { %v1213_v51 = vsel %vm1210_vm7, %v1212_v49, %v1208_v48 }
 0x432   : > { %1286 = vmatpush.msrb.mxu2 %v1270_v58 }
 0x434   : > { %1287 = vmatpush.msrb.mxu2 %v1269_v59 }
 0x436   : > { %1288 = vmatpush.msrb.mxu2 %v1268_v60 }
 0x438   : > { %1289 = vmatpush.msrb.mxu2 %v1267_v61 }
 0x43a   : > { %1290 = vmatpush.msrb.mxu2 %v1266_v2 }
 0x43c   : > { %1291 = vmatpush.msrb.mxu2 %v1265_v3 }
 0x43e   : > { %1292 = vmatpush.msrb.mxu2 %v1264_v4 }
 0x440   : > { %1293 = vmatpush.msrb.mxu2 %v1263_v5 }
 0x442   : > { %1294 = vmatpush.msrb.mxu2 %v1262_v0 }
 0x483   : > { %v1219_v43 = vpop.permute.xlu2 %1218 }
 0x484   : > { %v1221_v44 = vadd.f32 %v1219_v43, %v1215_v17 }
 0x486   : > { %1588 = vtanh.f32 %v1221_v44 }
 0x48c   : > { %v1589_v50 = vpop.eup %1588 }
 0x48d   : > { %v1223_v52 = vmul.f32 %v1589_v50, %v1213_v51 }
 0x48f   : > { %1225 = vrot.lane.b32.xlu0 %v1223_v52, %s1801_s20  ;;  %s589_s20 = scalar_lea.vmem [#allocation9], %s1983_s0 }
 0x490   : > { %s1345_s19 = sshll.u32 %s589_s20, 4  ;;  %s1346_s19 = int_to_ptr.vmem [resolvable:$true] %s1345_s19 }
 0x501   : > { %v1226_v62 = vpop.permute.xlu0 %1225 }
 0x502   : > { %v1228_v63 = vsel %vm969_vm14, %v1226_v62, %v1221_v44  ;;  %1490 = vmatmul.msk.f32.vlgmr.msra.gmra.mxu1 %vm969_vm14, %v1226_v62 }
 0x503   : > { %1229 = vst [vmem:[%s589_s20] sm:$0x1] %v1228_v63 }
 0x57f   : > { %v1258_v7 = vpop.f32.mrf.mxu1 }
 0x580   : > { %v1259_v8 = vadd.f32 %v1258_v7, %v1238_v6 }
 0x582   : > { %1590 = vtanh.f32 %v1259_v8 }
 0x588   : > { %v1591_v9 = vpop.eup %1590 }
 0x589   : > { %1295 = vmatmul.f32.vlgmr.msrb.gmra.mxu2 %v1591_v9 }
 0x60c   : > { %v1296_v12 = vpop.f32.mrf.mxu2 }
 0x60d   : > { %v1297_v13 = vadd.f32 %v1296_v12, %v1278_v10 }
 0x60f   : > { %v1300_v14 = vsel %vm1299_vm8, %v1297_v13, -inf }
 0x610   : > { %1301 = vmax.xlane.f32.xlu1 %v1300_v14 }
 0x683   : > { %v1302_v15 = vpop.xlane.xlu1 %1301 }
 0x684   : > { %v1303_v16 = vsub.f32 %v1297_v13, %v1302_v15 }
 0x686   : > { %v1304_v18 = vmul.f32 1.442695, %v1303_v16 }
 0x688   : > { %1592 = vpow2.f32 %v1304_v18 }
 0x68e   : > { %v1593_v1 = vpop.eup %1592 }
 0x68f   : > { %v1306_v19 = vsel %vm1299_vm8, %v1593_v1, 0.0 }
 0x690   : > { %1307 = vadd.xlane.f32.xlu2 %v1306_v19 }
 0x691   : > { %1713 = shalt.err (!%p1710_p12)
}
 0x692   : > { %1505 = dma.vmem_to_hbm [thread:$0]  (%p1956_p5), %s1346_s19, 16, %s1348_s3, %s1322_s13   ;;  %vm1312_vm9 = vcmask 56320   ;;  %vm1314_vm10 = vcmask 64512  }
 0x693   : > { %s2494_s29 = sld [smem:[#allocation23_spill]]  ;;  %s583_s15 = scalar_lea.vmem [#allocation8], %s1983_s0 }
 0x694   : > { %s1332_s21 = sshll.u32 %s583_s15, 4  ;;  %s1318_s19 = scalar_lea.sflag [#allocation4], %s1983_s0  ;;  %s1333_s21 = int_to_ptr.vmem [resolvable:$true] %s1332_s21 }
 0x699   : > { %s1330_s17 = scalar_lea.hbm %s2494_s29, %s1908_s25  ;;  %s1734_s27 = scalar_lea.hbm %s2494_s29, 2 }
 0x69a   : > { %s1334_s23 = sshll.u32 %s1330_s17, 4  ;;  %s1335_s23 = int_to_ptr.hbm [resolvable:$true] %s1334_s23 }
 0x69b   : > { %s1728_s3 = sshra.s32 %s1335_s23, 4  ;;  %s1729_s3 = int_to_ptr.hbm [resolvable:$true] %s1728_s3 }
 0x69c   : > { %s1730_s13 = scalar_lea.hbm %s1729_s3, 1  ;;  %p1735_p7 = scmp.lt.s32.totalorder %s1729_s3, %s2494_s29 }
 0x69d   : > { %p1731_p13 = scmp.ne.s32.totalorder %s1729_s3, %s1730_s13  ;;  %p1736_p8 = scmp.lt.s32.totalorder %s1734_s27, %s1730_s13 }
 0x69f   : > { %p1732_p0 = pnand %p1731_p13, %p1956_p5  ;;  %p1737_p1 = por %p1736_p8, %p1735_p7 }
 0x6a1   : > { %p1733_p3 = pneg %p1732_p0 }
 0x6a3   : > { %p1738_p4 = pnand %p1737_p1, %p1733_p3 }
 0x703   : > { %v1308_v20 = vpop.xlane.xlu2 %1307 }
 0x704   : > { %1594 = vlog2.f32 %v1308_v20 }
 0x70a   : > { %v1595_v21 = vpop.eup %1594 }
 0x70b   : > { %v1310_v23 = vmul.f32 0.6931472, %v1595_v21 }
 0x70d   : > { %v1311_v24 = vsub.f32 %v1303_v16, %v1310_v23 }
 0x70f   : > { %v1313_v25 = vsel %vm1312_vm9, %v1311_v24, %v1297_v13 }
 0x710   : > { %v1315_v26 = vsel %vm1314_vm10, %v1313_v25, 0.0 }
 0x711   : > { %1316 = vst [vmem:[%s583_s15] sm:$0x1] %v1315_v26 }
 0x712   : > { %1741 = shalt.err (!%p1738_p4)
}
 0x713   : > { %1504 = dma.vmem_to_hbm [thread:$0]  (%p1956_p5), %s1333_s21, 16, %s1335_s23, %s1318_s19  }
 0x714 PF: > { %s2495_s0 = sld [smem:[#allocation15_spill]]  ;;  %p2497_p9 = scmp.ge.s32.totalorder %s1788_s24, 2 }
 0x716   : > { %p1520_p10 = pnand %p2497_p9, %p1922_p6 }
 0x718   : > { %p1521_p2 = pneg %p1520_p10 }
 0x71a   : > { %s1359_s17 = sand.u32 1, %s2495_s0  }
 0x71b   : > { %s1360_s15 = scalar_lea.sflag [#allocation4], %s1359_s17 }
 0x71c   : > { %1767 = dma.done.wait (%p1521_p2), %s1360_s15, 16  }
 0x71d   : > { %1769 = vsyncadd (%p1521_p2), %s1360_s15, 4294967280  ;;  %s1369_s3 = scalar_lea.sflag [#allocation10], %s1359_s17 }
 0x71e   : > { %1771 = dma.done.wait (%p1521_p2), %s1369_s3, 16  }
 0x71f   : > { %1773 = vsyncadd (%p1521_p2), %s1369_s3, 4294967280  ;;  %s2498_s24 = sld [smem:[#allocation18_spill]]  ;;  %s2501_s21 = smov %s1780_s22 }
 0x720   : > { %s2499_s13 = sld [smem:[#allocation16_spill]] }
 0x721   : > { %s2500_s23 = sld [smem:[#allocation19_spill]] }
 0x725   : > { %p34_p5 = scmp.ge.s32.totalorder %s2498_s24, 4  }
 0x726   : > { %s2502_s22 = smov %s2499_s13 }
 0x727   :  { %36 = sbr.rel (!%p34_p5) target bundleno = 13 (0xd), region = 153 }
 0x72c   :  { %1374 = vsyncpa [#allocation3], 1 }
 0x72d   :  { %1376 = vsyncpa [#allocation3 + $0x1], 1 }
 0x72e   :  { %1377 = vsyncpa [#allocation6], 1 }
 0x72f   :  { %1378 = vsyncpa [#allocation4], 1 }
 0x730   :  { %1380 = vsyncpa [#allocation4 + $0x1], 1 }
 0x731   :  { %1381 = vsyncpa [#allocation10], 1 }
 0x732   :  { %1383 = vsyncpa [#allocation10 + $0x1], 1 }

</bundles_post_ra>
